<compile_context>
chip_gen: v7x
topology: tpu7x:2x2x1
jax: 0.10.0
libtpu: 0.0.40
codegen_flags: <defaults>
</compile_context>

<pallas_src>
import functools

import jax
import jax.numpy as jnp
from jax.experimental import pallas as pl
from jax.experimental.pallas import tpu as pltpu


def _round_up(x, m):
    return ((x + m - 1) // m) * m


# ----------------------------------------------------------------------------
# Kernel 1: hoisted layer-0 input projection over the whole sequence.
#   pre = X @ W_ih0^T + (b_ih0 + b_hh0),   X: (T*B, D)  ->  pre: (T*B, 4H)
# Tiled matmul, grid (M tiles, K tiles); K (reduction) is the last grid axis.
# ----------------------------------------------------------------------------
def _inproj_kernel(x_ref, w_ref, b_ref, o_ref, acc_ref):
    k = pl.program_id(1)

    @pl.when(k == 0)
    def _():
        acc_ref[...] = jnp.zeros_like(acc_ref)

    acc_ref[...] += jnp.dot(x_ref[...], w_ref[...],
                            preferred_element_type=jnp.float32)

    @pl.when(k == pl.num_programs(1) - 1)
    def _():
        o_ref[...] = (acc_ref[...] + b_ref[...]).astype(o_ref.dtype)


def input_projection(x_flat, w0t, b0, *, tm=128, tk=512):
    """x_flat: (M, D) bf16, w0t: (D, 4H) bf16, b0: (1, 4H) f32 -> (M, 4H) f32."""
    M, D = x_flat.shape
    G = w0t.shape[1]                           # 4 * hidden
    tm = min(tm, _round_up(M, 8))
    tk = min(tk, _round_up(D, 128))
    m_pad = _round_up(M, tm)
    d_pad = _round_up(D, tk)
    if m_pad != M or d_pad != D:               # zero-pad: contributes nothing
        x_flat = jnp.pad(x_flat, ((0, m_pad - M), (0, d_pad - D)))
    if d_pad != D:
        w0t = jnp.pad(w0t, ((0, d_pad - D), (0, 0)))

    out = pl.pallas_call(
        _inproj_kernel,
        out_shape=jax.ShapeDtypeStruct((m_pad, G), jnp.float32),
        grid_spec=pltpu.PrefetchScalarGridSpec(
            num_scalar_prefetch=0,
            grid=(m_pad // tm, d_pad // tk),
            in_specs=[
                pl.BlockSpec((tm, tk), lambda m, k: (m, k)),   # X tile
                pl.BlockSpec((tk, G), lambda m, k: (k, 0)),    # W_ih^T tile
                pl.BlockSpec((1, G), lambda m, k: (0, 0)),     # bias
            ],
            out_specs=pl.BlockSpec((tm, G), lambda m, k: (m, 0)),
            scratch_shapes=[pltpu.VMEM((tm, G), jnp.float32)],
        ),
        compiler_params=pltpu.CompilerParams(
            dimension_semantics=("parallel", "arbitrary")),
    )(x_flat, w0t, b0)
    return out[:M]


# ----------------------------------------------------------------------------
# Kernel 2: fused LSTM stack + classifier head.
# Grid (layer, time), both sequential.  Inter-layer hidden sequence, h/c state
# and gate pre-activations live in VMEM scratch.  Gate order (i, f, g, o)
# matches PyTorch.  Output written only at (last layer, last timestep).
# ----------------------------------------------------------------------------
def _lrcn_recurrent_kernel(pre0_ref, wih_ref, bih_ref, whh_ref,
                           w1_ref, b1_ref, w2_ref, b2_ref,
                           out_ref, hseq_ref, h_scr, c_scr, pre_scr):
    l = pl.program_id(0)
    t = pl.program_id(1)
    num_layers = pl.num_programs(0)
    seq_len = pl.num_programs(1)

    # Zero h/c at the start of every layer (PyTorch default zero init state).
    @pl.when(t == 0)
    def _():
        h_scr[...] = jnp.zeros_like(h_scr)
        c_scr[...] = jnp.zeros_like(c_scr)

    # Input-side gate pre-activations, gate-major (4, B, H), f32.
    @pl.when(l == 0)
    def _():
        pre_scr[...] = pre0_ref[...]          # hoisted X @ W_ih^T + b (layer 0)

    @pl.when(l > 0)
    def _():
        xb = hseq_ref[t].astype(jnp.bfloat16)  # previous layer's h_t (VMEM)
        for g in range(4):
            pre_scr[g] = (jnp.dot(xb, wih_ref[g],
                                  preferred_element_type=jnp.float32)
                          + bih_ref[g])

    hb = h_scr[...].astype(jnp.bfloat16)
    i_g = jax.nn.sigmoid(pre_scr[0] + jnp.dot(hb, whh_ref[0],
                                              preferred_element_type=jnp.float32))
    f_g = jax.nn.sigmoid(pre_scr[1] + jnp.dot(hb, whh_ref[1],
                                              preferred_element_type=jnp.float32))
    g_g = jnp.tanh(pre_scr[2] + jnp.dot(hb, whh_ref[2],
                                        preferred_element_type=jnp.float32))
    o_g = jax.nn.sigmoid(pre_scr[3] + jnp.dot(hb, whh_ref[3],
                                              preferred_element_type=jnp.float32))

    c_new = f_g * c_scr[...] + i_g * g_g
    h_new = o_g * jnp.tanh(c_new)
    c_scr[...] = c_new
    h_scr[...] = h_new

    # Hand the hidden sequence to the next layer through VMEM (read-then-write
    # at the same index, so a single (T, B, H) buffer is safe).  Not needed for
    # the final layer.
    @pl.when(l < num_layers - 1)
    def _():
        hseq_ref[t] = h_new

    # Fused classifier head on the final layer's last hidden state only.
    @pl.when(jnp.logical_and(l == num_layers - 1, t == seq_len - 1))
    def _():
        z1 = jnp.dot(h_new.astype(jnp.bfloat16), w1_ref[...],
                     preferred_element_type=jnp.float32) + b1_ref[...]
        z1 = jnp.maximum(z1, 0.0)
        # TODO(synk): nn.Dropout is identity in eval mode; training-mode
        # dropout (random mask + 1/(1-p) scaling) is not implemented here.
        z2 = jnp.dot(z1.astype(jnp.bfloat16), w2_ref[...],
                     preferred_element_type=jnp.float32) + b2_ref[...]
        z2 = z2 - jnp.max(z2, axis=-1, keepdims=True)
        e = jnp.exp(z2)
        out_ref[...] = (e / jnp.sum(e, axis=-1, keepdims=True)).astype(out_ref.dtype)


def lstm_stack_and_head(pre0_gm, prep):
    """pre0_gm: (T, 4, B, H) f32 precomputed layer-0 gates -> (B, NC) softmax."""
    T, _, B, H = pre0_gm.shape
    L = prep["whh"].shape[0]
    F1 = prep["w1t"].shape[1]
    NC = prep["w2t"].shape[1]

    return pl.pallas_call(
        _lrcn_recurrent_kernel,
        out_shape=jax.ShapeDtypeStruct((B, NC), jnp.float32),
        grid_spec=pltpu.PrefetchScalarGridSpec(
            num_scalar_prefetch=0,
            grid=(L, T),
            in_specs=[
                # Layer-0 precomputed gates (redundantly refetched for l>0;
                # the block is tiny compared to the weights).
                pl.BlockSpec((None, 4, B, H), lambda l, t: (t, 0, 0, 0)),
                # Per-layer input weights (gate-major); entry 0 is an unused
                # zero placeholder so the index map is simply `l`.
                pl.BlockSpec((None, 4, H, H), lambda l, t: (l, 0, 0, 0)),
                pl.BlockSpec((None, 4, 1, H), lambda l, t: (l, 0, 0, 0)),
                # Per-layer recurrent weights (gate-major).
                pl.BlockSpec((None, 4, H, H), lambda l, t: (l, 0, 0, 0)),
                # Head weights, resident for the whole call.
                pl.BlockSpec((H, F1), lambda l, t: (0, 0)),
                pl.BlockSpec((1, F1), lambda l, t: (0, 0)),
                pl.BlockSpec((F1, NC), lambda l, t: (0, 0)),
                pl.BlockSpec((1, NC), lambda l, t: (0, 0)),
            ],
            out_specs=pl.BlockSpec((B, NC), lambda l, t: (0, 0)),
            scratch_shapes=[
                pltpu.VMEM((T, B, H), jnp.float32),   # inter-layer hidden seq
                pltpu.VMEM((B, H), jnp.float32),      # h state
                pltpu.VMEM((B, H), jnp.float32),      # c state
                pltpu.VMEM((4, B, H), jnp.float32),   # gate pre-activations
            ],
        ),
        compiler_params=pltpu.CompilerParams(
            dimension_semantics=("arbitrary", "arbitrary")),
    )(pre0_gm, prep["wih"], prep["bih"], prep["whh"],
      prep["w1t"], prep["b1"], prep["w2t"], prep["b2"])


# ----------------------------------------------------------------------------
# Parameter init (PyTorch-like layout / ranges) and one-time kernel-layout prep.
# ----------------------------------------------------------------------------
def init_params(key, input_size, hidden_size, lstm_layers):
    params = {"lstm": []}
    k_lstm = 1.0 / jnp.sqrt(hidden_size)
    keys = jax.random.split(key, 4 * lstm_layers + 4)
    for layer in range(lstm_layers):
        in_sz = input_size if layer == 0 else hidden_size
        k0, k1, k2, k3 = keys[4 * layer: 4 * layer + 4]
        w_ih = jax.random.uniform(k0, (4 * hidden_size, in_sz),
                                  jnp.float32, -k_lstm, k_lstm)
        w_hh = jax.random.uniform(k1, (4 * hidden_size, hidden_size),
                                  jnp.float32, -k_lstm, k_lstm)
        b_ih = jax.random.uniform(k2, (4 * hidden_size,),
                                  jnp.float32, -k_lstm, k_lstm)
        b_hh = jax.random.uniform(k3, (4 * hidden_size,),
                                  jnp.float32, -k_lstm, k_lstm)
        params["lstm"].append({"w_ih": w_ih, "w_hh": w_hh, "b": b_ih + b_hh})

    kw1, kb1, kw2, kb2 = keys[4 * lstm_layers:]
    k1v = 1.0 / jnp.sqrt(hidden_size)
    params["w1"] = jax.random.uniform(kw1, (512, hidden_size),
                                      jnp.float32, -k1v, k1v)
    params["b1"] = jax.random.uniform(kb1, (512,), jnp.float32, -k1v, k1v)
    k2v = 1.0 / jnp.sqrt(512.0)
    params["w2"] = jax.random.uniform(kw2, (2, 512), jnp.float32, -k2v, k2v)
    params["b2"] = jax.random.uniform(kb2, (2,), jnp.float32, -k2v, k2v)
    return params


def prepare_params(params, hidden_size):
    """One-time conversion: pre-transposed, bf16 MXU operands, gate-major
    recurrent weights.  No per-forward-call transposes remain."""
    H = hidden_size
    layers = params["lstm"]

    def gate_major(w):                        # (4H, in) -> (4, in, H)
        return jnp.transpose(w.reshape(4, H, -1), (0, 2, 1))

    # Per-layer input weights/biases for layers >= 1; entry 0 is an unused
    # zero placeholder so the recurrent kernel can index by layer directly.
    wih_list = [jnp.zeros((4, H, H), jnp.float32)] + \
               [gate_major(lyr["w_ih"]) for lyr in layers[1:]]
    bih_list = [jnp.zeros((4, 1, H), jnp.float32)] + \
               [lyr["b"].reshape(4, 1, H) for lyr in layers[1:]]

    return {
        # Layer-0 input projection (hoisted matmul).
        "w0t": jnp.transpose(layers[0]["w_ih"]).astype(jnp.bfloat16),  # (D, 4H)
        "b0": layers[0]["b"].reshape(1, -1).astype(jnp.float32),       # (1, 4H)
        # Recurrent-kernel weights.
        "wih": jnp.stack(wih_list).astype(jnp.bfloat16),               # (L,4,H,H)
        "bih": jnp.stack(bih_list).astype(jnp.float32),                # (L,4,1,H)
        "whh": jnp.stack([gate_major(lyr["w_hh"])
                          for lyr in layers]).astype(jnp.bfloat16),    # (L,4,H,H)
        # Head weights.
        "w1t": jnp.transpose(params["w1"]).astype(jnp.bfloat16),       # (H, 512)
        "b1": params["b1"].reshape(1, -1).astype(jnp.float32),         # (1, 512)
        "w2t": jnp.transpose(params["w2"]).astype(jnp.bfloat16),       # (512, 2)
        "b2": params["b2"].reshape(1, -1).astype(jnp.float32),         # (1, 2)
    }


# ----------------------------------------------------------------------------
# Forward pass.
# ----------------------------------------------------------------------------
def lrcn_forward(conv_output, prep, seq_len):
    B = conv_output.shape[0]
    x = conv_output.reshape(B, seq_len, -1).astype(jnp.float32)      # (B, T, D)
    D = x.shape[-1]
    H = prep["whh"].shape[-1]

    # Pad batch to the f32 sublane granularity so MXU/VPU rows aren't mostly
    # empty; padded rows are sliced off at the end.
    B_pad = max(8, _round_up(B, 8))
    if B_pad != B:
        x = jnp.pad(x, ((0, B_pad - B), (0, 0), (0, 0)))

    x = jnp.transpose(x, (1, 0, 2))                                   # (T, Bp, D)
    x_flat = x.reshape(seq_len * B_pad, D).astype(jnp.bfloat16)

    # Hoisted layer-0 input projection over the whole sequence (parallel MXU).
    pre0 = input_projection(x_flat, prep["w0t"], prep["b0"])          # (T*Bp, 4H)
    pre0 = pre0.reshape(seq_len, B_pad, 4, H).transpose(0, 2, 1, 3)   # (T,4,Bp,H)

    out = lstm_stack_and_head(pre0, prep)                             # (Bp, 2)
    return out[:B]


if __name__ == "__main__":
    # Small, module-consistent shapes: batch=2, seq_len=8, per-frame conv
    # features C=4, Hs=Ws=8 => flattened D=256 (stands in for 25088).
    B, T, C, HS, WS = 2, 8, 4, 8, 8
    HIDDEN = 32
    LSTM_LAYERS = 2
    D = C * HS * WS

    key = jax.random.PRNGKey(0)
    k_x, k_p = jax.random.split(key)
    conv_output = jax.random.normal(k_x, (B, T, C, HS, WS), jnp.float32)
    params = init_params(k_p, D, HIDDEN, LSTM_LAYERS)
    prep = prepare_params(params, HIDDEN)

    fwd = jax.jit(functools.partial(lrcn_forward, seq_len=T))
    out = jax.block_until_ready(fwd(conv_output, prep))

    assert out.shape == (B, 2)
    assert bool(jnp.all(jnp.isfinite(out)))
    assert bool(jnp.allclose(jnp.sum(out, axis=-1), 1.0, atol=1e-5))
    print("KERNEL_OK")
</pallas_src>

<mosaic_0001>
module attributes {stable_mosaic.version = 11 : i64} {
  func.func @_inproj_kernel(%arg0: i32, %arg1: i32, %arg2: memref<64x256xbf16, #tpu.memory_space<vmem>>, %arg3: memref<256x128xbf16, #tpu.memory_space<vmem>>, %arg4: memref<1x128xf32, #tpu.memory_space<vmem>>, %arg5: memref<64x128xf32, #tpu.memory_space<vmem>>, %arg6: memref<64x128xf32, #tpu.memory_space<vmem>>) attributes {dimension_semantics = [#tpu.dimension_semantics<parallel>, #tpu.dimension_semantics<arbitrary>], iteration_bounds = array<i64: 1, 1>, scalar_prefetch = 0 : i64, scratch_operands = 1 : i64, tpu.core_type = #tpu.core_type<tc>, window_params = [{transform_indices = @transform_0, window_bounds = array<i64: 64, 256>}, {transform_indices = @transform_1, window_bounds = array<i64: 256, 128>}, {pipeline_mode = #tpu.pipeline_mode<synchronous>, transform_indices = @transform_2, window_bounds = array<i64: 1, 128>}, {transform_indices = @transform_3, window_bounds = array<i64: 64, 128>}]} {
    %c0_i32 = arith.constant 0 : i32
    %0 = arith.cmpi eq, %arg1, %c0_i32 : i32
    %1 = arith.extui %0 : i1 to i32
    %c0_i32_0 = arith.constant 0 : i32
    %2 = arith.cmpi ne, %1, %c0_i32_0 : i32
    scf.if %2 {
      %cst_10 = arith.constant 0.000000e+00 : f32
      %12 = vector.broadcast %cst_10 : f32 to vector<64x128xf32>
      %c0_11 = arith.constant 0 : index
      %c0_12 = arith.constant 0 : index
      %13 = vector.load %arg6[%c0_11, %c0_12] : memref<64x128xf32, #tpu.memory_space<vmem>>, vector<64x128xf32>
      tpu.vector_store %arg6[%c0_11, %c0_12], %12 {strides = array<i32>} : memref<64x128xf32, #tpu.memory_space<vmem>>, vector<64x128xf32>,
    } else {
    }
    %c0 = arith.constant 0 : index
    %c0_1 = arith.constant 0 : index
    %3 = vector.load %arg6[%c0, %c0_1] : memref<64x128xf32, #tpu.memory_space<vmem>>, vector<64x128xf32>
    %c0_2 = arith.constant 0 : index
    %c0_3 = arith.constant 0 : index
    %4 = vector.load %arg2[%c0_2, %c0_3] : memref<64x256xbf16, #tpu.memory_space<vmem>>, vector<64x256xbf16>
    %c0_4 = arith.constant 0 : index
    %c0_5 = arith.constant 0 : index
    %5 = vector.load %arg3[%c0_4, %c0_5] : memref<256x128xbf16, #tpu.memory_space<vmem>>, vector<256x128xbf16>
    %cst = arith.constant dense<0.000000e+00> : vector<64x128xf32>
    %6 = tpu.matmul %4, %5, %cst {dimension_numbers = #tpu.dot_dimension_numbers<[1], [0], [0], [1], [0, 0, 1, 1], [], []>} : vector<64x256xbf16>, vector<256x128xbf16>, vector<64x128xf32> -> vector<64x128xf32>
    %7 = arith.addf %3, %6 : vector<64x128xf32>
    %c0_6 = arith.constant 0 : index
    %c0_7 = arith.constant 0 : index
    %8 = vector.load %arg6[%c0_6, %c0_7] : memref<64x128xf32, #tpu.memory_space<vmem>>, vector<64x128xf32>
    tpu.vector_store %arg6[%c0_6, %c0_7], %7 {strides = array<i32>} : memref<64x128xf32, #tpu.memory_space<vmem>>, vector<64x128xf32>,
    %c0_i32_8 = arith.constant 0 : i32
    %9 = arith.cmpi eq, %arg1, %c0_i32_8 : i32
    %10 = arith.extui %9 : i1 to i32
    %c0_i32_9 = arith.constant 0 : i32
    %11 = arith.cmpi ne, %10, %c0_i32_9 : i32
    scf.if %11 {
      %c0_10 = arith.constant 0 : index
      %c0_11 = arith.constant 0 : index
      %12 = vector.load %arg6[%c0_10, %c0_11] : memref<64x128xf32, #tpu.memory_space<vmem>>, vector<64x128xf32>
      %c0_12 = arith.constant 0 : index
      %c0_13 = arith.constant 0 : index
      %13 = vector.load %arg4[%c0_12, %c0_13] : memref<1x128xf32, #tpu.memory_space<vmem>>, vector<1x128xf32>
      %14 = vector.broadcast %13 : vector<1x128xf32> to vector<64x128xf32>
      %15 = arith.addf %12, %14 : vector<64x128xf32>
      %c0_14 = arith.constant 0 : index
      %c0_15 = arith.constant 0 : index
      %16 = vector.load %arg5[%c0_14, %c0_15] : memref<64x128xf32, #tpu.memory_space<vmem>>, vector<64x128xf32>
      tpu.vector_store %arg5[%c0_14, %c0_15], %15 {strides = array<i32>} : memref<64x128xf32, #tpu.memory_space<vmem>>, vector<64x128xf32>,
    } else {
    }
    return
  }
  func.func @transform_0(%arg0: i32, %arg1: i32) -> (i32, i32) {
    %c0_i32 = arith.constant 0 : i32
    return %arg0, %arg1 : i32, i32
  }
  func.func @transform_1(%arg0: i32, %arg1: i32) -> (i32, i32) {
    %c0_i32 = arith.constant 0 : i32
    %c0_i32_0 = arith.constant 0 : i32
    return %arg1, %c0_i32 : i32, i32
  }
  func.func @transform_2(%arg0: i32, %arg1: i32) -> (i32, i32) {
    %c0_i32 = arith.constant 0 : i32
    %c0_i32_0 = arith.constant 0 : i32
    %c0_i32_1 = arith.constant 0 : i32
    return %c0_i32, %c0_i32_0 : i32, i32
  }
  func.func @transform_3(%arg0: i32, %arg1: i32) -> (i32, i32) {
    %c0_i32 = arith.constant 0 : i32
    %c0_i32_0 = arith.constant 0 : i32
    return %arg0, %c0_i32 : i32, i32
  }
}

module attributes {stable_mosaic.version = 11 : i64} {
  func.func @_lrcn_recurrent_kernel(%arg0: i32, %arg1: i32, %arg2: memref<1x4x8x32xf32, #tpu.memory_space<vmem>>, %arg3: memref<1x4x32x32xbf16, #tpu.memory_space<vmem>>, %arg4: memref<1x4x1x32xf32, #tpu.memory_space<vmem>>, %arg5: memref<1x4x32x32xbf16, #tpu.memory_space<vmem>>, %arg6: memref<32x512xbf16, #tpu.memory_space<vmem>>, %arg7: memref<1x512xf32, #tpu.memory_space<vmem>>, %arg8: memref<512x2xbf16, #tpu.memory_space<vmem>>, %arg9: memref<1x2xf32, #tpu.memory_space<vmem>>, %arg10: memref<8x2xf32, #tpu.memory_space<vmem>>, %arg11: memref<8x8x32xf32, #tpu.memory_space<vmem>>, %arg12: memref<8x32xf32, #tpu.memory_space<vmem>>, %arg13: memref<8x32xf32, #tpu.memory_space<vmem>>, %arg14: memref<4x8x32xf32, #tpu.memory_space<vmem>>) attributes {dimension_semantics = [#tpu.dimension_semantics<arbitrary>, #tpu.dimension_semantics<arbitrary>], iteration_bounds = array<i64: 2, 8>, scalar_prefetch = 0 : i64, scratch_operands = 4 : i64, tpu.core_type = #tpu.core_type<tc>, window_params = [{transform_indices = @transform_0, window_bounds = array<i64: 1, 4, 8, 32>}, {transform_indices = @transform_1, window_bounds = array<i64: 1, 4, 32, 32>}, {transform_indices = @transform_2, window_bounds = array<i64: 1, 4, 1, 32>}, {transform_indices = @transform_3, window_bounds = array<i64: 1, 4, 32, 32>}, {pipeline_mode = #tpu.pipeline_mode<synchronous>, transform_indices = @transform_4, window_bounds = array<i64: 32, 512>}, {pipeline_mode = #tpu.pipeline_mode<synchronous>, transform_indices = @transform_5, window_bounds = array<i64: 1, 512>}, {pipeline_mode = #tpu.pipeline_mode<synchronous>, transform_indices = @transform_6, window_bounds = array<i64: 512, 2>}, {pipeline_mode = #tpu.pipeline_mode<synchronous>, transform_indices = @transform_7, window_bounds = array<i64: 1, 2>}, {pipeline_mode = #tpu.pipeline_mode<synchronous>, transform_indices = @transform_8, window_bounds = array<i64: 8, 2>}]} {
    %c0_i32 = arith.constant 0 : i32
    %0 = arith.cmpi eq, %arg1, %c0_i32 : i32
    %1 = arith.extui %0 : i1 to i32
    %c0_i32_0 = arith.constant 0 : i32
    %2 = arith.cmpi ne, %1, %c0_i32_0 : i32
    scf.if %2 {
      %cst_46 = arith.constant 0.000000e+00 : f32
      %67 = vector.broadcast %cst_46 : f32 to vector<8x32xf32>
      %c0_47 = arith.constant 0 : index
      %c0_48 = arith.constant 0 : index
      %68 = vector.load %arg12[%c0_47, %c0_48] : memref<8x32xf32, #tpu.memory_space<vmem>>, vector<8x32xf32>
      tpu.vector_store %arg12[%c0_47, %c0_48], %67 {strides = array<i32>} : memref<8x32xf32, #tpu.memory_space<vmem>>, vector<8x32xf32>,
      %cst_49 = arith.constant 0.000000e+00 : f32
      %69 = vector.broadcast %cst_49 : f32 to vector<8x32xf32>
      %c0_50 = arith.constant 0 : index
      %c0_51 = arith.constant 0 : index
      %70 = vector.load %arg13[%c0_50, %c0_51] : memref<8x32xf32, #tpu.memory_space<vmem>>, vector<8x32xf32>
      tpu.vector_store %arg13[%c0_50, %c0_51], %69 {strides = array<i32>} : memref<8x32xf32, #tpu.memory_space<vmem>>, vector<8x32xf32>,
    } else {
    }
    %c0_i32_1 = arith.constant 0 : i32
    %3 = arith.cmpi eq, %arg0, %c0_i32_1 : i32
    %4 = arith.extui %3 : i1 to i32
    %c0_i32_2 = arith.constant 0 : i32
    %5 = arith.cmpi ne, %4, %c0_i32_2 : i32
    scf.if %5 {
      %c0_46 = arith.constant 0 : index
      %c0_47 = arith.constant 0 : index
      %c0_48 = arith.constant 0 : index
      %c0_49 = arith.constant 0 : index
      %67 = vector.load %arg2[%c0_46, %c0_47, %c0_48, %c0_49] : memref<1x4x8x32xf32, #tpu.memory_space<vmem>>, vector<1x4x8x32xf32>
      %68 = vector.shape_cast %67 : vector<1x4x8x32xf32> to vector<4x8x32xf32>
      %c0_50 = arith.constant 0 : index
      %c0_51 = arith.constant 0 : index
      %c0_52 = arith.constant 0 : index
      %69 = vector.load %arg14[%c0_50, %c0_51, %c0_52] : memref<4x8x32xf32, #tpu.memory_space<vmem>>, vector<4x8x32xf32>
      tpu.vector_store %arg14[%c0_50, %c0_51, %c0_52], %68 {strides = array<i32>} : memref<4x8x32xf32, #tpu.memory_space<vmem>>, vector<4x8x32xf32>,
    } else {
    }
    %c0_i32_3 = arith.constant 0 : i32
    %6 = arith.cmpi sgt, %arg0, %c0_i32_3 : i32
    %7 = arith.extui %6 : i1 to i32
    %c0_i32_4 = arith.constant 0 : i32
    %8 = arith.cmpi ne, %7, %c0_i32_4 : i32
    scf.if %8 {
      %67 = arith.index_cast %arg1 : i32 to index
      %c0_46 = arith.constant 0 : index
      %c0_47 = arith.constant 0 : index
      %68 = vector.load %arg11[%67, %c0_46, %c0_47] : memref<8x8x32xf32, #tpu.memory_space<vmem>>, vector<1x8x32xf32>
      %69 = vector.shape_cast %68 : vector<1x8x32xf32> to vector<8x32xf32>
      %70 = arith.truncf %69 : vector<8x32xf32> to vector<8x32xbf16>
      %c0_48 = arith.constant 0 : index
      %c0_49 = arith.constant 0 : index
      %c0_50 = arith.constant 0 : index
      %c0_51 = arith.constant 0 : index
      %71 = vector.load %arg3[%c0_48, %c0_49, %c0_50, %c0_51] : memref<1x4x32x32xbf16, #tpu.memory_space<vmem>>, vector<1x1x32x32xbf16>
      %72 = vector.shape_cast %71 : vector<1x1x32x32xbf16> to vector<32x32xbf16>
      %cst_52 = arith.constant dense<0.000000e+00> : vector<8x32xf32>
      %73 = tpu.matmul %70, %72, %cst_52 {dimension_numbers = #tpu.dot_dimension_numbers<[1], [0], [0], [1], [0, 0, 1, 1], [], []>} : vector<8x32xbf16>, vector<32x32xbf16>, vector<8x32xf32> -> vector<8x32xf32>
      %c0_53 = arith.constant 0 : index
      %c0_54 = arith.constant 0 : index
      %c0_55 = arith.constant 0 : index
      %c0_56 = arith.constant 0 : index
      %74 = vector.load %arg4[%c0_53, %c0_54, %c0_55, %c0_56] : memref<1x4x1x32xf32, #tpu.memory_space<vmem>>, vector<1x1x1x32xf32>
      %75 = vector.shape_cast %74 : vector<1x1x1x32xf32> to vector<1x32xf32>
      %76 = vector.broadcast %75 : vector<1x32xf32> to vector<8x32xf32>
      %77 = arith.addf %73, %76 : vector<8x32xf32>
      %c0_57 = arith.constant 0 : index
      %c0_58 = arith.constant 0 : index
      %c0_59 = arith.constant 0 : index
      %78 = vector.load %arg14[%c0_57, %c0_58, %c0_59] : memref<4x8x32xf32, #tpu.memory_space<vmem>>, vector<1x8x32xf32>
      %79 = vector.shape_cast %78 : vector<1x8x32xf32> to vector<8x32xf32>
      %80 = vector.shape_cast %77 : vector<8x32xf32> to vector<1x8x32xf32>
      tpu.vector_store %arg14[%c0_57, %c0_58, %c0_59], %80 {strides = array<i32>} : memref<4x8x32xf32, #tpu.memory_space<vmem>>, vector<1x8x32xf32>,
      %c0_60 = arith.constant 0 : index
      %c1_61 = arith.constant 1 : index
      %c0_62 = arith.constant 0 : index
      %c0_63 = arith.constant 0 : index
      %81 = vector.load %arg3[%c0_60, %c1_61, %c0_62, %c0_63] : memref<1x4x32x32xbf16, #tpu.memory_space<vmem>>, vector<1x1x32x32xbf16>
      %82 = vector.shape_cast %81 : vector<1x1x32x32xbf16> to vector<32x32xbf16>
      %cst_64 = arith.constant dense<0.000000e+00> : vector<8x32xf32>
      %83 = tpu.matmul %70, %82, %cst_64 {dimension_numbers = #tpu.dot_dimension_numbers<[1], [0], [0], [1], [0, 0, 1, 1], [], []>} : vector<8x32xbf16>, vector<32x32xbf16>, vector<8x32xf32> -> vector<8x32xf32>
      %c0_65 = arith.constant 0 : index
      %c1_66 = arith.constant 1 : index
      %c0_67 = arith.constant 0 : index
      %c0_68 = arith.constant 0 : index
      %84 = vector.load %arg4[%c0_65, %c1_66, %c0_67, %c0_68] : memref<1x4x1x32xf32, #tpu.memory_space<vmem>>, vector<1x1x1x32xf32>
      %85 = vector.shape_cast %84 : vector<1x1x1x32xf32> to vector<1x32xf32>
      %86 = vector.broadcast %85 : vector<1x32xf32> to vector<8x32xf32>
      %87 = arith.addf %83, %86 : vector<8x32xf32>
      %c1_69 = arith.constant 1 : index
      %c0_70 = arith.constant 0 : index
      %c0_71 = arith.constant 0 : index
      %88 = vector.load %arg14[%c1_69, %c0_70, %c0_71] : memref<4x8x32xf32, #tpu.memory_space<vmem>>, vector<1x8x32xf32>
      %89 = vector.shape_cast %88 : vector<1x8x32xf32> to vector<8x32xf32>
      %90 = vector.shape_cast %87 : vector<8x32xf32> to vector<1x8x32xf32>
      tpu.vector_store %arg14[%c1_69, %c0_70, %c0_71], %90 {strides = array<i32>} : memref<4x8x32xf32, #tpu.memory_space<vmem>>, vector<1x8x32xf32>,
      %c0_72 = arith.constant 0 : index
      %c2_73 = arith.constant 2 : index
      %c0_74 = arith.constant 0 : index
      %c0_75 = arith.constant 0 : index
      %91 = vector.load %arg3[%c0_72, %c2_73, %c0_74, %c0_75] : memref<1x4x32x32xbf16, #tpu.memory_space<vmem>>, vector<1x1x32x32xbf16>
      %92 = vector.shape_cast %91 : vector<1x1x32x32xbf16> to vector<32x32xbf16>
      %cst_76 = arith.constant dense<0.000000e+00> : vector<8x32xf32>
      %93 = tpu.matmul %70, %92, %cst_76 {dimension_numbers = #tpu.dot_dimension_numbers<[1], [0], [0], [1], [0, 0, 1, 1], [], []>} : vector<8x32xbf16>, vector<32x32xbf16>, vector<8x32xf32> -> vector<8x32xf32>
      %c0_77 = arith.constant 0 : index
      %c2_78 = arith.constant 2 : index
      %c0_79 = arith.constant 0 : index
      %c0_80 = arith.constant 0 : index
      %94 = vector.load %arg4[%c0_77, %c2_78, %c0_79, %c0_80] : memref<1x4x1x32xf32, #tpu.memory_space<vmem>>, vector<1x1x1x32xf32>
      %95 = vector.shape_cast %94 : vector<1x1x1x32xf32> to vector<1x32xf32>
      %96 = vector.broadcast %95 : vector<1x32xf32> to vector<8x32xf32>
      %97 = arith.addf %93, %96 : vector<8x32xf32>
      %c2_81 = arith.constant 2 : index
      %c0_82 = arith.constant 0 : index
      %c0_83 = arith.constant 0 : index
      %98 = vector.load %arg14[%c2_81, %c0_82, %c0_83] : memref<4x8x32xf32, #tpu.memory_space<vmem>>, vector<1x8x32xf32>
      %99 = vector.shape_cast %98 : vector<1x8x32xf32> to vector<8x32xf32>
      %100 = vector.shape_cast %97 : vector<8x32xf32> to vector<1x8x32xf32>
      tpu.vector_store %arg14[%c2_81, %c0_82, %c0_83], %100 {strides = array<i32>} : memref<4x8x32xf32, #tpu.memory_space<vmem>>, vector<1x8x32xf32>,
      %c0_84 = arith.constant 0 : index
      %c3_85 = arith.constant 3 : index
      %c0_86 = arith.constant 0 : index
      %c0_87 = arith.constant 0 : index
      %101 = vector.load %arg3[%c0_84, %c3_85, %c0_86, %c0_87] : memref<1x4x32x32xbf16, #tpu.memory_space<vmem>>, vector<1x1x32x32xbf16>
      %102 = vector.shape_cast %101 : vector<1x1x32x32xbf16> to vector<32x32xbf16>
      %cst_88 = arith.constant dense<0.000000e+00> : vector<8x32xf32>
      %103 = tpu.matmul %70, %102, %cst_88 {dimension_numbers = #tpu.dot_dimension_numbers<[1], [0], [0], [1], [0, 0, 1, 1], [], []>} : vector<8x32xbf16>, vector<32x32xbf16>, vector<8x32xf32> -> vector<8x32xf32>
      %c0_89 = arith.constant 0 : index
      %c3_90 = arith.constant 3 : index
      %c0_91 = arith.constant 0 : index
      %c0_92 = arith.constant 0 : index
      %104 = vector.load %arg4[%c0_89, %c3_90, %c0_91, %c0_92] : memref<1x4x1x32xf32, #tpu.memory_space<vmem>>, vector<1x1x1x32xf32>
      %105 = vector.shape_cast %104 : vector<1x1x1x32xf32> to vector<1x32xf32>
      %106 = vector.broadcast %105 : vector<1x32xf32> to vector<8x32xf32>
      %107 = arith.addf %103, %106 : vector<8x32xf32>
      %c3_93 = arith.constant 3 : index
      %c0_94 = arith.constant 0 : index
      %c0_95 = arith.constant 0 : index
      %108 = vector.load %arg14[%c3_93, %c0_94, %c0_95] : memref<4x8x32xf32, #tpu.memory_space<vmem>>, vector<1x8x32xf32>
      %109 = vector.shape_cast %108 : vector<1x8x32xf32> to vector<8x32xf32>
      %110 = vector.shape_cast %107 : vector<8x32xf32> to vector<1x8x32xf32>
      tpu.vector_store %arg14[%c3_93, %c0_94, %c0_95], %110 {strides = array<i32>} : memref<4x8x32xf32, #tpu.memory_space<vmem>>, vector<1x8x32xf32>,
    } else {
    }
    %c0 = arith.constant 0 : index
    %c0_5 = arith.constant 0 : index
    %9 = vector.load %arg12[%c0, %c0_5] : memref<8x32xf32, #tpu.memory_space<vmem>>, vector<8x32xf32>
    %10 = arith.truncf %9 : vector<8x32xf32> to vector<8x32xbf16>
    %c0_6 = arith.constant 0 : index
    %c0_7 = arith.constant 0 : index
    %c0_8 = arith.constant 0 : index
    %11 = vector.load %arg14[%c0_6, %c0_7, %c0_8] : memref<4x8x32xf32, #tpu.memory_space<vmem>>, vector<1x8x32xf32>
    %12 = vector.shape_cast %11 : vector<1x8x32xf32> to vector<8x32xf32>
    %c0_9 = arith.constant 0 : index
    %c0_10 = arith.constant 0 : index
    %c0_11 = arith.constant 0 : index
    %c0_12 = arith.constant 0 : index
    %13 = vector.load %arg5[%c0_9, %c0_10, %c0_11, %c0_12] : memref<1x4x32x32xbf16, #tpu.memory_space<vmem>>, vector<1x1x32x32xbf16>
    %14 = vector.shape_cast %13 : vector<1x1x32x32xbf16> to vector<32x32xbf16>
    %cst = arith.constant dense<0.000000e+00> : vector<8x32xf32>
    %15 = tpu.matmul %10, %14, %cst {dimension_numbers = #tpu.dot_dimension_numbers<[1], [0], [0], [1], [0, 0, 1, 1], [], []>} : vector<8x32xbf16>, vector<32x32xbf16>, vector<8x32xf32> -> vector<8x32xf32>
    %16 = arith.addf %12, %15 : vector<8x32xf32>
    %17 = arith.negf %16 : vector<8x32xf32>
    %18 = math.exp %17 : vector<8x32xf32>
    %cst_13 = arith.constant 1.000000e+00 : f32
    %19 = vector.broadcast %cst_13 : f32 to vector<8x32xf32>
    %20 = arith.addf %19, %18 : vector<8x32xf32>
    %21 = arith.divf %19, %20 : vector<8x32xf32>
    %c1 = arith.constant 1 : index
    %c0_14 = arith.constant 0 : index
    %c0_15 = arith.constant 0 : index
    %22 = vector.load %arg14[%c1, %c0_14, %c0_15] : memref<4x8x32xf32, #tpu.memory_space<vmem>>, vector<1x8x32xf32>
    %23 = vector.shape_cast %22 : vector<1x8x32xf32> to vector<8x32xf32>
    %c0_16 = arith.constant 0 : index
    %c1_17 = arith.constant 1 : index
    %c0_18 = arith.constant 0 : index
    %c0_19 = arith.constant 0 : index
    %24 = vector.load %arg5[%c0_16, %c1_17, %c0_18, %c0_19] : memref<1x4x32x32xbf16, #tpu.memory_space<vmem>>, vector<1x1x32x32xbf16>
    %25 = vector.shape_cast %24 : vector<1x1x32x32xbf16> to vector<32x32xbf16>
    %cst_20 = arith.constant dense<0.000000e+00> : vector<8x32xf32>
    %26 = tpu.matmul %10, %25, %cst_20 {dimension_numbers = #tpu.dot_dimension_numbers<[1], [0], [0], [1], [0, 0, 1, 1], [], []>} : vector<8x32xbf16>, vector<32x32xbf16>, vector<8x32xf32> -> vector<8x32xf32>
    %27 = arith.addf %23, %26 : vector<8x32xf32>
    %28 = arith.negf %27 : vector<8x32xf32>
    %29 = math.exp %28 : vector<8x32xf32>
    %cst_21 = arith.constant 1.000000e+00 : f32
    %30 = vector.broadcast %cst_21 : f32 to vector<8x32xf32>
    %31 = arith.addf %30, %29 : vector<8x32xf32>
    %32 = arith.divf %30, %31 : vector<8x32xf32>
    %c2 = arith.constant 2 : index
    %c0_22 = arith.constant 0 : index
    %c0_23 = arith.constant 0 : index
    %33 = vector.load %arg14[%c2, %c0_22, %c0_23] : memref<4x8x32xf32, #tpu.memory_space<vmem>>, vector<1x8x32xf32>
    %34 = vector.shape_cast %33 : vector<1x8x32xf32> to vector<8x32xf32>
    %c0_24 = arith.constant 0 : index
    %c2_25 = arith.constant 2 : index
    %c0_26 = arith.constant 0 : index
    %c0_27 = arith.constant 0 : index
    %35 = vector.load %arg5[%c0_24, %c2_25, %c0_26, %c0_27] : memref<1x4x32x32xbf16, #tpu.memory_space<vmem>>, vector<1x1x32x32xbf16>
    %36 = vector.shape_cast %35 : vector<1x1x32x32xbf16> to vector<32x32xbf16>
    %cst_28 = arith.constant dense<0.000000e+00> : vector<8x32xf32>
    %37 = tpu.matmul %10, %36, %cst_28 {dimension_numbers = #tpu.dot_dimension_numbers<[1], [0], [0], [1], [0, 0, 1, 1], [], []>} : vector<8x32xbf16>, vector<32x32xbf16>, vector<8x32xf32> -> vector<8x32xf32>
    %38 = arith.addf %34, %37 : vector<8x32xf32>
    %39 = math.tanh %38 : vector<8x32xf32>
    %c3 = arith.constant 3 : index
    %c0_29 = arith.constant 0 : index
    %c0_30 = arith.constant 0 : index
    %40 = vector.load %arg14[%c3, %c0_29, %c0_30] : memref<4x8x32xf32, #tpu.memory_space<vmem>>, vector<1x8x32xf32>
    %41 = vector.shape_cast %40 : vector<1x8x32xf32> to vector<8x32xf32>
    %c0_31 = arith.constant 0 : index
    %c3_32 = arith.constant 3 : index
    %c0_33 = arith.constant 0 : index
    %c0_34 = arith.constant 0 : index
    %42 = vector.load %arg5[%c0_31, %c3_32, %c0_33, %c0_34] : memref<1x4x32x32xbf16, #tpu.memory_space<vmem>>, vector<1x1x32x32xbf16>
    %43 = vector.shape_cast %42 : vector<1x1x32x32xbf16> to vector<32x32xbf16>
    %cst_35 = arith.constant dense<0.000000e+00> : vector<8x32xf32>
    %44 = tpu.matmul %10, %43, %cst_35 {dimension_numbers = #tpu.dot_dimension_numbers<[1], [0], [0], [1], [0, 0, 1, 1], [], []>} : vector<8x32xbf16>, vector<32x32xbf16>, vector<8x32xf32> -> vector<8x32xf32>
    %45 = arith.addf %41, %44 : vector<8x32xf32>
    %46 = arith.negf %45 : vector<8x32xf32>
    %47 = math.exp %46 : vector<8x32xf32>
    %cst_36 = arith.constant 1.000000e+00 : f32
    %48 = vector.broadcast %cst_36 : f32 to vector<8x32xf32>
    %49 = arith.addf %48, %47 : vector<8x32xf32>
    %50 = arith.divf %48, %49 : vector<8x32xf32>
    %c0_37 = arith.constant 0 : index
    %c0_38 = arith.constant 0 : index
    %51 = vector.load %arg13[%c0_37, %c0_38] : memref<8x32xf32, #tpu.memory_space<vmem>>, vector<8x32xf32>
    %52 = arith.mulf %32, %51 : vector<8x32xf32>
    %53 = arith.mulf %21, %39 : vector<8x32xf32>
    %54 = arith.addf %52, %53 : vector<8x32xf32>
    %55 = math.tanh %54 : vector<8x32xf32>
    %56 = arith.mulf %50, %55 : vector<8x32xf32>
    %c0_39 = arith.constant 0 : index
    %c0_40 = arith.constant 0 : index
    %57 = vector.load %arg13[%c0_39, %c0_40] : memref<8x32xf32, #tpu.memory_space<vmem>>, vector<8x32xf32>
    tpu.vector_store %arg13[%c0_39, %c0_40], %54 {strides = array<i32>} : memref<8x32xf32, #tpu.memory_space<vmem>>, vector<8x32xf32>,
    %c0_41 = arith.constant 0 : index
    %c0_42 = arith.constant 0 : index
    %58 = vector.load %arg12[%c0_41, %c0_42] : memref<8x32xf32, #tpu.memory_space<vmem>>, vector<8x32xf32>
    tpu.vector_store %arg12[%c0_41, %c0_42], %56 {strides = array<i32>} : memref<8x32xf32, #tpu.memory_space<vmem>>, vector<8x32xf32>,
    %c1_i32 = arith.constant 1 : i32
    %59 = arith.cmpi slt, %arg0, %c1_i32 : i32
    %60 = arith.extui %59 : i1 to i32
    %c0_i32_43 = arith.constant 0 : i32
    %61 = arith.cmpi ne, %60, %c0_i32_43 : i32
    scf.if %61 {
      %67 = arith.index_cast %arg1 : i32 to index
      %c0_46 = arith.constant 0 : index
      %c0_47 = arith.constant 0 : index
      %68 = vector.load %arg11[%67, %c0_46, %c0_47] : memref<8x8x32xf32, #tpu.memory_space<vmem>>, vector<1x8x32xf32>
      %69 = vector.shape_cast %68 : vector<1x8x32xf32> to vector<8x32xf32>
      %70 = vector.shape_cast %56 : vector<8x32xf32> to vector<1x8x32xf32>
      tpu.vector_store %arg11[%67, %c0_46, %c0_47], %70 {strides = array<i32>} : memref<8x8x32xf32, #tpu.memory_space<vmem>>, vector<1x8x32xf32>,
    } else {
    }
    %c1_i32_44 = arith.constant 1 : i32
    %62 = arith.cmpi eq, %arg0, %c1_i32_44 : i32
    %c7_i32 = arith.constant 7 : i32
    %63 = arith.cmpi eq, %arg1, %c7_i32 : i32
    %64 = arith.andi %62, %63 : i1
    %65 = arith.extui %64 : i1 to i32
    %c0_i32_45 = arith.constant 0 : i32
    %66 = arith.cmpi ne, %65, %c0_i32_45 : i32
    scf.if %66 {
      %67 = arith.truncf %56 : vector<8x32xf32> to vector<8x32xbf16>
      %c0_46 = arith.constant 0 : index
      %c0_47 = arith.constant 0 : index
      %68 = vector.load %arg6[%c0_46, %c0_47] : memref<32x512xbf16, #tpu.memory_space<vmem>>, vector<32x512xbf16>
      %cst_48 = arith.constant dense<0.000000e+00> : vector<8x512xf32>
      %69 = tpu.matmul %67, %68, %cst_48 {dimension_numbers = #tpu.dot_dimension_numbers<[1], [0], [0], [1], [0, 0, 1, 1], [], []>} : vector<8x32xbf16>, vector<32x512xbf16>, vector<8x512xf32> -> vector<8x512xf32>
      %c0_49 = arith.constant 0 : index
      %c0_50 = arith.constant 0 : index
      %70 = vector.load %arg7[%c0_49, %c0_50] : memref<1x512xf32, #tpu.memory_space<vmem>>, vector<1x512xf32>
      %71 = vector.broadcast %70 : vector<1x512xf32> to vector<8x512xf32>
      %72 = arith.addf %69, %71 : vector<8x512xf32>
      %cst_51 = arith.constant 0.000000e+00 : f32
      %73 = vector.broadcast %cst_51 : f32 to vector<8x512xf32>
      %74 = arith.maximumf %72, %73 : vector<8x512xf32>
      %75 = arith.truncf %74 : vector<8x512xf32> to vector<8x512xbf16>
      %c0_52 = arith.constant 0 : index
      %c0_53 = arith.constant 0 : index
      %76 = vector.load %arg8[%c0_52, %c0_53] : memref<512x2xbf16, #tpu.memory_space<vmem>>, vector<512x2xbf16>
      %cst_54 = arith.constant dense<0.000000e+00> : vector<8x2xf32>
      %77 = tpu.matmul %75, %76, %cst_54 {dimension_numbers = #tpu.dot_dimension_numbers<[1], [0], [0], [1], [0, 0, 1, 1], [], []>} : vector<8x512xbf16>, vector<512x2xbf16>, vector<8x2xf32> -> vector<8x2xf32>
      %c0_55 = arith.constant 0 : index
      %c0_56 = arith.constant 0 : index
      %78 = vector.load %arg9[%c0_55, %c0_56] : memref<1x2xf32, #tpu.memory_space<vmem>>, vector<1x2xf32>
      %79 = vector.broadcast %78 : vector<1x2xf32> to vector<8x2xf32>
      %80 = arith.addf %77, %79 : vector<8x2xf32>
      %cst_57 = arith.constant dense<0xFF800000> : vector<8xf32>
      %81 = vector.multi_reduction <maximumf>, %80, %cst_57 [1] : vector<8x2xf32> to vector<8xf32>
      %82 = vector.shape_cast %81 : vector<8xf32> to vector<8x1xf32>
      %83 = vector.broadcast %82 : vector<8x1xf32> to vector<8x2xf32>
      %84 = arith.subf %80, %83 : vector<8x2xf32>
      %85 = math.exp %84 : vector<8x2xf32>
      %cst_58 = arith.constant dense<0.000000e+00> : vector<8xf32>
      %86 = vector.multi_reduction <add>, %85, %cst_58 [1] : vector<8x2xf32> to vector<8xf32>
      %87 = vector.shape_cast %86 : vector<8xf32> to vector<8x1xf32>
      %88 = vector.broadcast %87 : vector<8x1xf32> to vector<8x2xf32>
      %89 = arith.divf %85, %88 : vector<8x2xf32>
      %c0_59 = arith.constant 0 : index
      %c0_60 = arith.constant 0 : index
      %90 = vector.load %arg10[%c0_59, %c0_60] : memref<8x2xf32, #tpu.memory_space<vmem>>, vector<8x2xf32>
      tpu.vector_store %arg10[%c0_59, %c0_60], %89 {strides = array<i32>} : memref<8x2xf32, #tpu.memory_space<vmem>>, vector<8x2xf32>,
    } else {
    }
    return
  }
  func.func @transform_0(%arg0: i32, %arg1: i32) -> (i32, i32, i32, i32) {
    %c0_i32 = arith.constant 0 : i32
    %c0_i32_0 = arith.constant 0 : i32
    %c0_i32_1 = arith.constant 0 : i32
    %c0_i32_2 = arith.constant 0 : i32
    return %arg1, %c0_i32, %c0_i32_0, %c0_i32_1 : i32, i32, i32, i32
  }
  func.func @transform_1(%arg0: i32, %arg1: i32) -> (i32, i32, i32, i32) {
    %c0_i32 = arith.constant 0 : i32
    %c0_i32_0 = arith.constant 0 : i32
    %c0_i32_1 = arith.constant 0 : i32
    %c0_i32_2 = arith.constant 0 : i32
    return %arg0, %c0_i32, %c0_i32_0, %c0_i32_1 : i32, i32, i32, i32
  }
  func.func @transform_2(%arg0: i32, %arg1: i32) -> (i32, i32, i32, i32) {
    %c0_i32 = arith.constant 0 : i32
    %c0_i32_0 = arith.constant 0 : i32
    %c0_i32_1 = arith.constant 0 : i32
    %c0_i32_2 = arith.constant 0 : i32
    return %arg0, %c0_i32, %c0_i32_0, %c0_i32_1 : i32, i32, i32, i32
  }
  func.func @transform_3(%arg0: i32, %arg1: i32) -> (i32, i32, i32, i32) {
    %c0_i32 = arith.constant 0 : i32
    %c0_i32_0 = arith.constant 0 : i32
    %c0_i32_1 = arith.constant 0 : i32
    %c0_i32_2 = arith.constant 0 : i32
    return %arg0, %c0_i32, %c0_i32_0, %c0_i32_1 : i32, i32, i32, i32
  }
  func.func @transform_4(%arg0: i32, %arg1: i32) -> (i32, i32) {
    %c0_i32 = arith.constant 0 : i32
    %c0_i32_0 = arith.constant 0 : i32
    %c0_i32_1 = arith.constant 0 : i32
    return %c0_i32, %c0_i32_0 : i32, i32
  }
  func.func @transform_5(%arg0: i32, %arg1: i32) -> (i32, i32) {
    %c0_i32 = arith.constant 0 : i32
    %c0_i32_0 = arith.constant 0 : i32
    %c0_i32_1 = arith.constant 0 : i32
    return %c0_i32, %c0_i32_0 : i32, i32
  }
  func.func @transform_6(%arg0: i32, %arg1: i32) -> (i32, i32) {
    %c0_i32 = arith.constant 0 : i32
    %c0_i32_0 = arith.constant 0 : i32
    %c0_i32_1 = arith.constant 0 : i32
    return %c0_i32, %c0_i32_0 : i32, i32
  }
  func.func @transform_7(%arg0: i32, %arg1: i32) -> (i32, i32) {
    %c0_i32 = arith.constant 0 : i32
    %c0_i32_0 = arith.constant 0 : i32
    %c0_i32_1 = arith.constant 0 : i32
    return %c0_i32, %c0_i32_0 : i32, i32
  }
  func.func @transform_8(%arg0: i32, %arg1: i32) -> (i32, i32) {
    %c0_i32 = arith.constant 0 : i32
    %c0_i32_0 = arith.constant 0 : i32
    %c0_i32_1 = arith.constant 0 : i32
    return %c0_i32, %c0_i32_0 : i32, i32
  }
}

</mosaic_0001>

<bundles_post_ra>
// kernel: lrcn_forward.2
= control target key start
LH: loop header
LB: loop body
LE: loop exit
PB: predicated region body
PF: predicated region fallthrough
CT: control target
= control target key end

     0   :  { %s558_s1 = inlined_call_operand.vmem [shape: bf16[256,128], index: 1, kind: input, shape index: {}]   ;;  %s559_s0 = inlined_call_operand.vmem [shape: bf16[64,256], index: 0, kind: input, shape index: {}]   ;;  %s560_s2 = inlined_call_operand.vmem [shape: f32[1,128], index: 2, kind: input, shape index: {}]   ;;  %s561_s3 = inlined_call_operand.vmem [shape: f32[64,128], index: 3, kind: output, shape index: {}]  }
   0x1   :  { %v411_v0 = vld [vmem:[%s558_s1 + $0x40] sm:$0xff]   ;;  %v413_v2 = vld [vmem:[%s558_s1 + $0x48] sm:$0xff]   ;;  %v415_v4 = vld [vmem:[%s558_s1 + $0x50] sm:$0xff]  }
   0x2   :  { %v412_v1 = vld [vmem:[%s558_s1] sm:$0xff]   ;;  %355 = vmatprep.subr.bf16.mxu0 %v411_v0  ;;  %395 = vmatprep.subr.bf16.mxu1 %v411_v0  ;;  %v414_v3 = vld [vmem:[%s558_s1 + $0x8] sm:$0xff]   ;;  %v416_v5 = vld [vmem:[%s558_s1 + $0x10] sm:$0xff]  }
   0x3   :  { %356 = vmatpush3.bf16.msra.mxu0 %v412_v1  ;;  %403 = vmatpush3.bf16.msra.mxu1 %v412_v1  ;;  %v417_v6 = vld [vmem:[%s558_s1 + $0x58] sm:$0xff]   ;;  %v419_v8 = vld [vmem:[%s558_s1 + $0x60] sm:$0xff]   ;;  %v421_v10 = vld [vmem:[%s558_s1 + $0x68] sm:$0xff]  }
   0x4   :  { %357 = vmatprep.subr.bf16.mxu0 %v413_v2  ;;  %396 = vmatprep.subr.bf16.mxu1 %v413_v2  ;;  %v418_v7 = vld [vmem:[%s558_s1 + $0x18] sm:$0xff]   ;;  %v420_v9 = vld [vmem:[%s558_s1 + $0x20] sm:$0xff]   ;;  %v422_v13 = vld [vmem:[%s558_s1 + $0x28] sm:$0xff]  }
   0x5   :  { %v429_v11 = vld [vmem:[%s559_s0 + $0x4] ss:$8 sps:$4 sm:$0xff]   ;;  %v423_v14 = vld [vmem:[%s558_s1 + $0x70] sm:$0xff]   ;;  %v425_v16 = vld [vmem:[%s558_s1 + $0x78] sm:$0xff]  }
   0x6   :  { %v432_v12 = vld [vmem:[%s559_s0 + $0x24] ss:$8 sps:$4 sm:$0xff]   ;;  %243 = vmatprep.mubr.bf16.mxu0 %v429_v11  ;;  %v424_v15 = vld [vmem:[%s558_s1 + $0x30] sm:$0xff]   ;;  %v426_v17 = vld [vmem:[%s558_s1 + $0x38] sm:$0xff]  }
   0x7   :  { %358 = vmatpush3.bf16.msra.mxu0 %v414_v3  ;;  %404 = vmatpush3.bf16.msra.mxu1 %v414_v3  ;;  %v427_v18 = vld [vmem:[%s559_s0] ss:$8 sps:$4 sm:$0xff]   ;;  %v433_v20 = vld [vmem:[%s559_s0 + $0x14] ss:$8 sps:$4 sm:$0xff]   ;;  %v437_v22 = vld [vmem:[%s559_s0 + $0x10] ss:$8 sps:$4 sm:$0xff]  }
   0x8   :  { %359 = vmatprep.subr.bf16.mxu0 %v415_v4  ;;  %397 = vmatprep.subr.bf16.mxu1 %v415_v4  ;;  %v430_v19 = vld [vmem:[%s559_s0 + $0x20] ss:$8 sps:$4 sm:$0xff]   ;;  %v435_v21 = vld [vmem:[%s559_s0 + $0x34] ss:$8 sps:$4 sm:$0xff]   ;;  %v438_v23 = vld [vmem:[%s559_s0 + $0x30] ss:$8 sps:$4 sm:$0xff]  }
   0x9   :  { %259 = vmatprep.mubr.bf16.mxu1 %v432_v12  ;;  %v354_v27 = vld [vmem:[%s560_s2] ss:$0 sm:$0xff] }
   0xb   :  { %360 = vmatpush3.bf16.msra.mxu0 %v416_v5  ;;  %405 = vmatpush3.bf16.msra.mxu1 %v416_v5 }
   0xc   :  { %361 = vmatprep.subr.bf16.mxu0 %v417_v6  ;;  %398 = vmatprep.subr.bf16.mxu1 %v417_v6 }
   0xf   :  { %362 = vmatpush3.bf16.msra.mxu0 %v418_v7  ;;  %406 = vmatpush3.bf16.msra.mxu1 %v418_v7 }
  0x10   :  { %363 = vmatprep.subr.bf16.mxu0 %v419_v8  ;;  %399 = vmatprep.subr.bf16.mxu1 %v419_v8 }
  0x13   :  { %364 = vmatpush3.bf16.msra.mxu0 %v420_v9  ;;  %407 = vmatpush3.bf16.msra.mxu1 %v420_v9 }
  0x14   :  { %365 = vmatprep.subr.bf16.mxu0 %v421_v10  ;;  %400 = vmatprep.subr.bf16.mxu1 %v421_v10 }
  0x17   :  { %366 = vmatpush3.bf16.msra.mxu0 %v422_v13  ;;  %408 = vmatpush3.bf16.msra.mxu1 %v422_v13 }
  0x18   :  { %367 = vmatprep.subr.bf16.mxu0 %v423_v14  ;;  %401 = vmatprep.subr.bf16.mxu1 %v423_v14 }
  0x1b   :  { %368 = vmatpush3.bf16.msra.mxu0 %v424_v15  ;;  %409 = vmatpush3.bf16.msra.mxu1 %v424_v15 }
  0x1c   :  { %369 = vmatprep.subr.bf16.mxu0 %v425_v16  ;;  %402 = vmatprep.subr.bf16.mxu1 %v425_v16 }
  0x1f   :  { %370 = vmatpush3.bf16.msra.mxu0 %v426_v17  ;;  %410 = vmatpush3.bf16.msra.mxu1 %v426_v17 }
  0x22   :  { %244 = vmatmul.mubr.bf16.vlgmr.msra.gmra.mrb[0].mxu0 %v427_v18  ;;  %260 = vmatmul.mubr.bf16.vlgmr.msra.gmra.mrb[0].mxu1 %v430_v19 }
  0x23   :  { %251 = vmatprep.mubr.bf16.mxu0 %v433_v20  ;;  %267 = vmatprep.mubr.bf16.mxu1 %v435_v21 }
  0x2a   :  { %252 = vmatmul.mubr.bf16.gmra.mrb[4].mxu0 %v437_v22  ;;  %268 = vmatmul.mubr.bf16.gmra.mrb[4].mxu1 %v438_v23 }
  0xf5   :  { %v371_v24 = vpop.f32.mrb[0].mxu0  ;;  %v383_v25 = vpop.f32.mrb[0].mxu1 }
  0xf6   :  { %v372_v26 = vpop.f32.mrb[1].mxu0  ;;  %v384_v28 = vpop.f32.mrb[1].mxu1 }
  0xf7   :  { %v373_v29 = vadd.f32 %v372_v26, %v371_v24  ;;  %v385_v30 = vadd.f32 %v384_v28, %v383_v25  ;;  %v374_v31 = vpop.f32.mrb[2].mxu0  ;;  %v386_v32 = vpop.f32.mrb[2].mxu1 }
  0xf8   :  { %v375_v33 = vpop.f32.mrb[3].mxu0  ;;  %v387_v34 = vpop.f32.mrb[3].mxu1 }
  0xf9   :  { %v310_v35 = vadd.f32 %v373_v29, %v354_v27  ;;  %v314_v36 = vadd.f32 %v385_v30, %v354_v27  ;;  %v376_v37 = vadd.f32 %v375_v33, %v374_v31  ;;  %v388_v38 = vadd.f32 %v387_v34, %v386_v32 }
  0xfb   :  { %318 = vst [vmem:[%s561_s3] sm:$0xff] %v310_v35  ;;  %322 = vst [vmem:[%s561_s3 + $0x20] sm:$0xff] %v314_v36  ;;  %v311_v39 = vadd.f32 %v376_v37, %v354_v27  ;;  %v315_v40 = vadd.f32 %v388_v38, %v354_v27 }
  0xfd   :  { %319 = vst [vmem:[%s561_s3 + $0x8] sm:$0xff] %v311_v39  ;;  %323 = vst [vmem:[%s561_s3 + $0x28] sm:$0xff] %v315_v40  ;;  %v377_v41 = vpop.f32.mrb[4].mxu0  ;;  %v389_v42 = vpop.f32.mrb[4].mxu1 }
  0xfe   :  { %v378_v43 = vpop.f32.mrb[5].mxu0  ;;  %v390_v44 = vpop.f32.mrb[5].mxu1 }
  0xff   :  { %v379_v45 = vadd.f32 %v378_v43, %v377_v41  ;;  %v391_v46 = vadd.f32 %v390_v44, %v389_v42  ;;  %v380_v47 = vpop.f32.mrb[6].mxu0  ;;  %v392_v48 = vpop.f32.mrb[6].mxu1 }
 0x100   :  { %v381_v49 = vpop.f32.mrb[7].mxu0  ;;  %v393_v50 = vpop.f32.mrb[7].mxu1 }
 0x101   :  { %v312_v51 = vadd.f32 %v379_v45, %v354_v27  ;;  %v316_v52 = vadd.f32 %v391_v46, %v354_v27  ;;  %v382_v53 = vadd.f32 %v381_v49, %v380_v47  ;;  %v394_v54 = vadd.f32 %v393_v50, %v392_v48 }
 0x103   :  { %320 = vst [vmem:[%s561_s3 + $0x10] sm:$0xff] %v312_v51  ;;  %324 = vst [vmem:[%s561_s3 + $0x30] sm:$0xff] %v316_v52  ;;  %v313_v55 = vadd.f32 %v382_v53, %v354_v27  ;;  %v317_v56 = vadd.f32 %v394_v54, %v354_v27 }
 0x105   :  { %321 = vst [vmem:[%s561_s3 + $0x18] sm:$0xff] %v313_v55  ;;  %325 = vst [vmem:[%s561_s3 + $0x38] sm:$0xff] %v317_v56 }

// kernel: lrcn_forward.3
= control target key start
LH: loop header
LB: loop body
LE: loop exit
PB: predicated region body
PF: predicated region fallthrough
CT: control target
= control target key end

     0   :  { %s2013_s27 = smov 0   ;;  %s2015_s28 = smov 0   ;;  %s2266_s0 = inlined_call_operand.vmem [shape: f32[8,4,8,32], index: 0, kind: input, shape index: {}]   ;;  %s2267_s1 = inlined_call_operand.vmem [shape: bf16[2,4,32,32], index: 1, kind: input, shape index: {}]   ;;  %s2268_s2 = inlined_call_operand.vmem [shape: f32[2,4,1,32], index: 2, kind: input, shape index: {}]   ;;  %s2269_s3 = inlined_call_operand.vmem [shape: bf16[2,4,32,32], index: 3, kind: input, shape index: {}]   ;;  %s2270_s4 = inlined_call_operand.vmem [shape: bf16[32,512], index: 4, kind: input, shape index: {}]   ;;  %s2271_s5 = inlined_call_operand.vmem [shape: f32[1,512], index: 5, kind: input, shape index: {}]   ;;  %s2272_s6 = inlined_call_operand.vmem [shape: bf16[512,2], index: 6, kind: input, shape index: {}]   ;;  %s2273_s7 = inlined_call_operand.vmem [shape: f32[1,2], index: 7, kind: input, shape index: {}]   ;;  %s2274_s8 = inlined_call_operand.vmem [shape: f32[8,2], index: 8, kind: output, shape index: {}]  }
   0x1   :  { %s2017_s29 = smov 0   ;;  %s2019_s30 = smov 0  }
   0x2   :  { %s2021_s9 = smov 0  }
   0x3 LB: > { %s27_s10 = sadd.s32 1, %s1952_s29  ;;  %s30_s11 = sadd.s32 1, %s1956_s30  ;;  %s1960_s9 = sphi %s2021_s9, %s18_s9   ;;  %s1956_s30 = sphi %s2019_s30, %s2280_s30   ;;  %s1952_s29 = sphi %s2017_s29, %s2279_s29   ;;  %s1948_s28 = sphi %s2015_s28, %s2278_s28   ;;  %s1944_s27 = sphi %s2013_s27, %s2277_s27  }
   0x4   : > { %p28_p0 = scmp.ge.s32.totalorder %s27_s10, 8  ;;  %p1544_p1 = scmp.ge.s32.totalorder %s1960_s9, 1 }
   0x5   : > { %p298_p2 = scmp.lt.s32.totalorder %s1960_s9, 17 }
   0x6   : > { %s2282_s10 = smov (%p28_p0, %s27_s10), 0  ;;  %s2284_s11 = smov (!%p28_p0, %s30_s11), %s1956_s30 }
   0x7   : > { %p299_p3 = pnand %p1544_p1, %p298_p2  ;;  %p32_p4 = scmp.ge.s32.totalorder %s2284_s11, 2 }
   0x8   : > { %p341_p5 = scmp.lt.s32.totalorder (!%p299_p3), %s1944_s27, 7  ;;  %p346_p6 = scmp.lt.s32.totalorder (!%p299_p3), %s1948_s28, 1 }
   0x9   : > { %s2286_s11 = smov (%p32_p4, %s2284_s11), 0  ;;  %302 = sbr.rel (%p299_p3) target bundleno = 1303 (0x517), region = 52 }
   0xa   : > { %2275 = sst [smem:[#allocation6_spill]] %s2286_s11  ;;  %p1552_p7 = scmp.ne.s32.totalorder (!%p299_p3), %s1944_s27, 0 }
  0x10   : > { %s342_s12 = scalar_select %p341_p5, %s1944_s27, 7 }
  0x11   : > { %s347_s13 = scalar_select %p346_p6, %s1948_s28, 1 }
  0x12   : > { %s1661_s14 = sshll.u32 %s342_s12, 5  ;;  %364 = sbr.rel (%p1552_p7) target bundleno = 25 (0x19), region = 56  ;;  %vm365_vm0 = vcmask (!%p1552_p7), 261120   ;;  %v1962_v0 = vmov (!%p1552_p7), 0.0  }
  0x13   : > { %s345_s17 = scalar_lea.vmem %s2266_s0, %s1661_s14  ;;  %s1662_s18 = sshll.u32 %s347_s13, 6  ;;  %366 = vst.msk [vmem:[#allocation3] sm:$0xff] (!%p1552_p7), %vm365_vm0, %v1962_v0  ;;  %367 = vst.msk [vmem:[#allocation4] sm:$0xff] (!%p1552_p7), %vm365_vm0, %v1962_v0 }
  0x14   : > { %s2057_s21 = scalar_lea.vmem %s2267_s1, %s1662_s18  ;;  %s1549_s22 = sshll.u32 %s347_s13, 2 }
  0x15   : > { %s2062_s25 = scalar_lea.vmem %s2268_s2, %s1549_s22  ;;  %s2067_s12 = scalar_lea.vmem %s2269_s3, %s1662_s18 }
  0x19 PF: > { %p1553_p8 = scmp.ne.s32.totalorder %s1948_s28, 0 }
  0x1a   : > { %v372_v1 = vld [vmem:[%s345_s17] sm:$0xff] (!%p1553_p8)  ;;  %vm376_vm1 = vcmask (!%p1553_p8), 261120   ;;  %v373_v2 = vld [vmem:[%s345_s17 + $0x8] sm:$0xff] (!%p1553_p8)  ;;  %v374_v3 = vld [vmem:[%s345_s17 + $0x10] sm:$0xff] (!%p1553_p8) }
  0x1b   : > { %371 = sbr.rel (%p1553_p8) target bundleno = 34 (0x22), region = 60  ;;  %377 = vst.msk [vmem:[#allocation5] sm:$0xff] (!%p1553_p8), %vm376_vm1, %v372_v1  ;;  %378 = vst.msk [vmem:[#allocation5 + $0x8] sm:$0xff] (!%p1553_p8), %vm376_vm1, %v373_v2  ;;  %v375_v4 = vld [vmem:[%s345_s17 + $0x18] sm:$0xff] (!%p1553_p8) }
  0x1c   : > { %379 = vst.msk [vmem:[#allocation5 + $0x10] sm:$0xff] (!%p1553_p8), %vm376_vm1, %v374_v3  ;;  %380 = vst.msk [vmem:[#allocation5 + $0x18] sm:$0xff] (!%p1553_p8), %vm376_vm1, %v375_v4 }
  0x22 PF: > { %p1554_p9 = scmp.le.s32.totalorder %s1948_s28, 0 }
  0x23   : > { %v1842_v5 = vld [vmem:[%s2057_s21] sm:$0xff] (!%p1554_p9)   ;;  %v1963_v6 = vmov (!%p1554_p9), 0.0   ;;  %v1843_v7 = vld [vmem:[%s2057_s21 + $0x10] sm:$0xff] (!%p1554_p9)   ;;  %v1844_v8 = vld [vmem:[%s2057_s21 + $0x8] sm:$0xff] (!%p1554_p9)   ;;  %vm1964_vm2 = vmmov (!%p1554_p9), 0   ;;  %s1555_s11 = sshll.u32 (!%p1554_p9), %s1944_s27, 3 }
  0x24   : > { %384 = sbr.rel (%p1554_p9) target bundleno = 268 (0x10c), region = 64  ;;  %1732 = vmatprep.subr.bf16.mxu0 (!%p1554_p9), %v1963_v6  ;;  %1740 = vmatprep.subr.bf16.mxu1 (!%p1554_p9), %v1963_v6  ;;  %v1845_v9 = vld [vmem:[%s2057_s21 + $0x18] sm:$0xff] (!%p1554_p9)   ;;  %s386_s13 = scalar_lea.vmem (!%p1554_p9), [#allocation2], %s1555_s11  ;;  %vm412_vm3 = vcmask (!%p1554_p9), 261120   ;;  %v1846_v12 = vld [vmem:[%s2057_s21 + $0x20] sm:$0xff] (!%p1554_p9)   ;;  %v1847_v13 = vld [vmem:[%s2057_s21 + $0x30] sm:$0xff] (!%p1554_p9)  }
  0x25   : > { %1733 = vmatpush3.bf16.msra.mxu0 (!%p1554_p9), %v1842_v5  ;;  %1736 = vmatprep.mubr.msk.bf16.mxu0 (!%p1554_p9), %vm1964_vm2, %v1963_v6  ;;  %v387_v10 = vld [vmem:[%s386_s13] sm:$0xff] (!%p1554_p9)  ;;  %v1848_v14 = vld [vmem:[%s2057_s21 + $0x28] sm:$0xff] (!%p1554_p9)   ;;  %v1849_v15 = vld [vmem:[%s2057_s21 + $0x38] sm:$0xff] (!%p1554_p9)  }
  0x26   : > { %1741 = vmatpush3.bf16.msra.mxu1 (!%p1554_p9), %v1843_v7  ;;  %1734 = vmatprep.subr.bf16.mxu0 (!%p1554_p9), %v1963_v6  ;;  %v388_v11 = vpack.c.bf16 (!%p1554_p9), %v387_v10, %v387_v10  ;;  %v1556_v16 = vld [vmem:[%s2062_s25] ss:$0 sm:$0xff] (!%p1554_p9)  ;;  %v1565_v17 = vld [vmem:[%s2062_s25 + $0x1] ss:$0 sm:$0xff] (!%p1554_p9)  ;;  %v1574_v28 = vld [vmem:[%s2062_s25 + $0x2] ss:$0 sm:$0xff] (!%p1554_p9) }
  0x27   : > { %1742 = vmatprep.subr.bf16.mxu1 (!%p1554_p9), %v1963_v6  ;;  %1744 = vmatprep.mubr.msk.bf16.mxu1 (!%p1554_p9), %vm1964_vm2, %v1963_v6  ;;  %v1583_v29 = vld [vmem:[%s2062_s25 + $0x3] ss:$0 sm:$0xff] (!%p1554_p9) }
  0x29   : > { %1735 = vmatpush3.bf16.msra.mxu0 (!%p1554_p9), %v1844_v8 }
  0x2a   : > { %1743 = vmatpush3.bf16.msra.mxu1 (!%p1554_p9), %v1845_v9  ;;  %1748 = vmatprep.subr.bf16.mxu0 (!%p1554_p9), %v1963_v6 }
  0x2b   : > { %1756 = vmatprep.subr.bf16.mxu1 %v1963_v6 }
  0x2c   : > { %1737 = vmatmul.mubr.msk.bf16.vlgmr.msra.gmra.mrb[0].mxu0 %vm412_vm3, %v388_v11 }
  0x2d   : > { %1745 = vmatmul.mubr.msk.bf16.vlgmr.msra.gmra.mrb[0].mxu1 %vm412_vm3, %v388_v11  ;;  %1749 = vmatpush3.bf16.msra.mxu0 %v1846_v12 }
  0x2e   : > { %1757 = vmatpush3.bf16.msra.mxu1 %v1847_v13  ;;  %1750 = vmatprep.subr.bf16.mxu0 %v1963_v6 }
  0x2f   : > { %1758 = vmatprep.subr.bf16.mxu1 %v1963_v6  ;;  %1752 = vmatprep.mubr.msk.bf16.mxu0 %vm1964_vm2, %v1963_v6 }
  0x30   : > { %1760 = vmatprep.mubr.msk.bf16.mxu1 %vm1964_vm2, %v1963_v6 }
  0x31   : > { %1751 = vmatpush3.bf16.msra.mxu0 %v1848_v14 }
  0x32   : > { %1759 = vmatpush3.bf16.msra.mxu1 %v1849_v15 }
  0x34   : > { %1753 = vmatmul.mubr.msk.bf16.vlgmr.msra.gmra.mrb[4].mxu0 %vm412_vm3, %v388_v11 }
  0x35   : > { %1761 = vmatmul.mubr.msk.bf16.vlgmr.msra.gmra.mrb[4].mxu1 %vm412_vm3, %v388_v11 }
  0xff   : > { %v450_v18 = vpop.f32.mrb[0].mxu0 }
 0x100   : > { %v451_v19 = vadd.f32 %v1556_v16, %v450_v18  ;;  %v516_v20 = vpop.f32.mrb[0].mxu1  ;;  %v1738_v21 = vpop.f32.mrb[1].mxu0 }
 0x101   : > { %v517_v22 = vadd.f32 %v1565_v17, %v516_v20  ;;  %v1746_v23 = vpop.f32.mrb[1].mxu1  ;;  %v453_v24 = vpop.f32.mrb[2].mxu0 }
 0x102   : > { %456 = vst.msk [vmem:[#allocation5] sm:$0xff] %vm412_vm3, %v451_v19  ;;  %v519_v25 = vpop.f32.mrb[2].mxu1  ;;  %v1739_v26 = vpop.f32.mrb[3].mxu0 }
 0x103   : > { %523 = vst.msk [vmem:[#allocation5 + $0x8] sm:$0xff] %vm412_vm3, %v517_v22  ;;  %v1747_v27 = vpop.f32.mrb[3].mxu1 }
 0x107   : > { %v583_v30 = vpop.f32.mrb[4].mxu0 }
 0x108   : > { %v584_v31 = vadd.f32 %v1574_v28, %v583_v30  ;;  %v650_v32 = vpop.f32.mrb[4].mxu1  ;;  %v1754_v33 = vpop.f32.mrb[5].mxu0 }
 0x109   : > { %v651_v34 = vadd.f32 %v1583_v29, %v650_v32  ;;  %v1762_v35 = vpop.f32.mrb[5].mxu1  ;;  %v586_v36 = vpop.f32.mrb[6].mxu0 }
 0x10a   : > { %590 = vst.msk [vmem:[#allocation5 + $0x10] sm:$0xff] %vm412_vm3, %v584_v31  ;;  %v653_v37 = vpop.f32.mrb[6].mxu1  ;;  %v1755_v38 = vpop.f32.mrb[7].mxu0 }
 0x10b   : > { %657 = vst.msk [vmem:[#allocation5 + $0x18] sm:$0xff] %vm412_vm3, %v651_v34  ;;  %v1763_v39 = vpop.f32.mrb[7].mxu1 }
 0x10c PF: > { %v1850_v40 = vld [vmem:[%s2067_s12] sm:$0xff]   ;;  %v1965_v41 = vmov 0.0   ;;  %v1851_v42 = vld [vmem:[%s2067_s12 + $0x10] sm:$0xff]   ;;  %v1852_v43 = vld [vmem:[%s2067_s12 + $0x8] sm:$0xff]   ;;  %vm1966_vm4 = vmmov 0   ;;  %vm677_vm5 = vcmask 261120  }
 0x10d   : > { %1764 = vmatprep.subr.bf16.mxu0 %v1965_v41  ;;  %1772 = vmatprep.subr.bf16.mxu1 %v1965_v41  ;;  %v1853_v44 = vld [vmem:[%s2067_s12 + $0x18] sm:$0xff]   ;;  %v658_v45 = vld [vmem:[#allocation3] sm:$0xff]  ;;  %v1855_v48 = vld [vmem:[%s2067_s12 + $0x30] sm:$0xff]   ;;  %p1614_p10 = scmp.ge.s32.totalorder %s1948_s28, 1 }
 0x10e   : > { %1765 = vmatpush3.bf16.msra.mxu0 %v1850_v40  ;;  %1768 = vmatprep.mubr.msk.bf16.mxu0 %vm1966_vm4, %v1965_v41  ;;  %v659_v46 = vpack.c.bf16 %v658_v45, %v658_v45  ;;  %v1854_v47 = vld [vmem:[%s2067_s12 + $0x20] sm:$0xff]   ;;  %v1856_v49 = vld [vmem:[%s2067_s12 + $0x28] sm:$0xff]   ;;  %v1857_v50 = vld [vmem:[%s2067_s12 + $0x38] sm:$0xff]   ;;  %s1615_s14 = sshll.u32 (!%p1614_p10), %s1944_s27, 3 }
 0x10f   : > { %1773 = vmatpush3.bf16.msra.mxu1 %v1851_v42  ;;  %1766 = vmatprep.subr.bf16.mxu0 %v1965_v41  ;;  %v660_v51 = vld [vmem:[#allocation5] sm:$0xff]  ;;  %v729_v52 = vld [vmem:[#allocation5 + $0x8] sm:$0xff]  ;;  %v921_v20 = vld [vmem:[#allocation4] sm:$0xff]  ;;  %s934_s15 = scalar_lea.vmem (!%p1614_p10), [#allocation2], %s1615_s14 }
 0x110   : > { %1774 = vmatprep.subr.bf16.mxu1 %v1965_v41  ;;  %1776 = vmatprep.mubr.msk.bf16.mxu1 %vm1966_vm4, %v1965_v41 }
 0x111   : > { %v795_v3 = vld [vmem:[#allocation5 + $0x10] sm:$0xff] }
 0x112   : > { %1767 = vmatpush3.bf16.msra.mxu0 %v1852_v43  ;;  %v856_v1 = vld [vmem:[#allocation5 + $0x18] sm:$0xff] }
 0x113   : > { %1775 = vmatpush3.bf16.msra.mxu1 %v1853_v44  ;;  %1780 = vmatprep.subr.bf16.mxu0 %v1965_v41 }
 0x114   : > { %1788 = vmatprep.subr.bf16.mxu1 %v1965_v41 }
 0x115   : > { %1769 = vmatmul.mubr.msk.bf16.vlgmr.msra.gmra.mrb[0].mxu0 %vm677_vm5, %v659_v46 }
 0x116   : > { %1777 = vmatmul.mubr.msk.bf16.vlgmr.msra.gmra.mrb[0].mxu1 %vm677_vm5, %v659_v46  ;;  %1781 = vmatpush3.bf16.msra.mxu0 %v1854_v47 }
 0x117   : > { %1789 = vmatpush3.bf16.msra.mxu1 %v1855_v48  ;;  %1782 = vmatprep.subr.bf16.mxu0 %v1965_v41 }
 0x118   : > { %1790 = vmatprep.subr.bf16.mxu1 %v1965_v41  ;;  %1784 = vmatprep.mubr.msk.bf16.mxu0 %vm1966_vm4, %v1965_v41 }
 0x119   : > { %1792 = vmatprep.mubr.msk.bf16.mxu1 %vm1966_vm4, %v1965_v41 }
 0x11a   : > { %1783 = vmatpush3.bf16.msra.mxu0 %v1856_v49 }
 0x11b   : > { %1791 = vmatpush3.bf16.msra.mxu1 %v1857_v50 }
 0x11d   : > { %1785 = vmatmul.mubr.msk.bf16.vlgmr.msra.gmra.mrb[4].mxu0 %vm677_vm5, %v659_v46 }
 0x11e   : > { %1793 = vmatmul.mubr.msk.bf16.vlgmr.msra.gmra.mrb[4].mxu1 %vm677_vm5, %v659_v46 }
 0x1e8   : > { %v715_v53 = vpop.f32.mrb[0].mxu0 }
 0x1e9   : > { %v721_v54 = vadd.f32 %v715_v53, %v660_v51  ;;  %v781_v55 = vpop.f32.mrb[0].mxu1  ;;  %v1770_v56 = vpop.f32.mrb[1].mxu0 }
 0x1ea   : > { %v787_v57 = vadd.f32 %v781_v55, %v729_v52  ;;  %v1778_v58 = vpop.f32.mrb[1].mxu1  ;;  %v718_v59 = vpop.f32.mrb[2].mxu0 }
 0x1eb   : > { %v1590_v60 = vmul.f32 -1.442695, %v721_v54  ;;  %v784_v61 = vpop.f32.mrb[2].mxu1  ;;  %v1771_v62 = vpop.f32.mrb[3].mxu0 }
 0x1ec   : > { %v1598_v63 = vmul.f32 -1.442695, %v787_v57  ;;  %v1779_v0 = vpop.f32.mrb[3].mxu1 }
 0x1ed   : > { %1858 = vpow2.f32 %v1590_v60 }
 0x1ee   : > { %1860 = vpow2.f32 %v1598_v63 }
 0x1f0   : > { %v847_v2 = vpop.f32.mrb[4].mxu0 }
 0x1f1   : > { %v908_v4 = vpop.f32.mrb[4].mxu1  ;;  %v1786_v5 = vpop.f32.mrb[5].mxu0  ;;  %v853_v11 = vadd.f32 %v847_v2, %v795_v3 }
 0x1f2   : > { %v914_v6 = vadd.f32 %v908_v4, %v856_v1  ;;  %v1794_v7 = vpop.f32.mrb[5].mxu1  ;;  %v850_v8 = vpop.f32.mrb[6].mxu0 }
 0x1f3   : > { %v911_v9 = vpop.f32.mrb[6].mxu1  ;;  %v1787_v10 = vpop.f32.mrb[7].mxu0 }
 0x1f4   : > { %v1613_v12 = vmul.f32 -1.442695, %v914_v6  ;;  %v1795_v13 = vpop.f32.mrb[7].mxu1 }
 0x1f6   : > { %1862 = vpow2.f32 %v1613_v12 }
 0x1f7   : > { %v1859_v14 = vpop.eup %1858  ;;  %1864 = vtanh.f32 %v853_v11 }
 0x1f8   : > { %v1861_v15 = vpop.eup %1860  ;;  %v725_v16 = vadd.f32 1.0, %v1859_v14 }
 0x1f9   : > { %v791_v17 = vadd.f32 1.0, %v1861_v15 }
 0x1fa   : > { %1866 = vrcp.f32 %v725_v16 }
 0x1fb   : > { %1868 = vrcp.f32 %v791_v17 }
 0x200   : > { %v1863_v18 = vpop.eup %1862 }
 0x201   : > { %v1865_v19 = vpop.eup %1864  ;;  %v918_v22 = vadd.f32 1.0, %v1863_v18 }
 0x203   : > { %1870 = vrcp.f32 %v918_v22 }
 0x204   : > { %v1867_v21 = vpop.eup %1866 }
 0x205   : > { %v1869_v23 = vpop.eup %1868  ;;  %v923_v24 = vmul.f32 %v1867_v21, %v1865_v19 }
 0x206   : > { %v922_v25 = vmul.f32 %v1869_v23, %v921_v20 }
 0x208   : > { %v924_v26 = vadd.f32 %v923_v24, %v922_v25 }
 0x20a   : > { %1872 = vtanh.f32 %v924_v26  ;;  %927 = vst.msk [vmem:[#allocation4] sm:$0xff] %vm677_vm5, %v924_v26 }
 0x20d   : > { %v1871_v27 = vpop.eup %1870 }
 0x211   : > { %932 = sbr.rel (%p1614_p10) target bundleno = 536 (0x218), region = 68 }
 0x214   : > { %v1873_v28 = vpop.eup %1872 }
 0x215   : > { %v926_v29 = vmul.f32 %v1873_v28, %v1871_v27 }
 0x217   : > { %928 = vst.msk [vmem:[#allocation3] sm:$0xff] %vm677_vm5, %v926_v29  ;;  %935 = vst.msk [vmem:[%s934_s15] sm:$0xff] (!%p1614_p10), %vm677_vm5, %v926_v29 }
 0x218 PF: > { %p936_p11 = scmp.eq.s32.totalorder %s1948_s28, 1  ;;  %p937_p12 = scmp.eq.s32.totalorder %s1944_s27, 7 }
 0x21a   : > { %p938_p13 = pnand %p937_p12, %p936_p11 }
 0x21b   : > { %v1874_v30 = vld [vmem:[%s2270_s4 + $0x4] ss:$16 sps:$4 sm:$0xff] (!%p938_p13)   ;;  %v1876_v31 = vld [vmem:[%s2270_s4 + $0xc] ss:$16 sps:$4 sm:$0xff] (!%p938_p13)   ;;  %v1967_v32 = vmov (!%p938_p13), 0   ;;  %v942_v40 = vpack.c.bf16 (!%p938_p13), %v926_v29, %v926_v29  ;;  %v953_v8 = vlaneseq (!%p938_p13)  ;;  %vm1449_vm6 = vcmask (!%p938_p13), 15360  }
 0x21c   : > { %941 = sbr.rel (%p938_p13) target bundleno = 1303 (0x517), region = 72  ;;  %1048 = vmatprep.mubr.bf16.mxu0 (!%p938_p13), %v1967_v32  ;;  %1089 = vmatprep.mubr.bf16.mxu1 (!%p938_p13), %v1967_v32  ;;  %v1878_v33 = vld [vmem:[%s2270_s4] ss:$16 sps:$4 sm:$0xff] (!%p938_p13)   ;;  %v1879_v34 = vld [vmem:[%s2270_s4 + $0x8] ss:$16 sps:$4 sm:$0xff] (!%p938_p13)  }
 0x21d   : > { %1016 = vmatprep.subr.bf16.mxu0 (!%p938_p13), %v1874_v30  ;;  %1057 = vmatprep.subr.bf16.mxu1 (!%p938_p13), %v1876_v31  ;;  %v1880_v35 = vld [vmem:[%s2270_s4 + $0x24] ss:$16 sps:$4 sm:$0xff] (!%p938_p13)   ;;  %v1882_v36 = vld [vmem:[%s2270_s4 + $0x2c] ss:$16 sps:$4 sm:$0xff] (!%p938_p13)   ;;  %v1884_v37 = vld [vmem:[%s2270_s4 + $0x20] ss:$16 sps:$4 sm:$0xff] (!%p938_p13)  }
 0x21e   : > { %1017 = vmatpush1.bf16.msra.mxu0 (!%p938_p13), %v1878_v33  ;;  %1058 = vmatpush1.bf16.msra.mxu1 (!%p938_p13), %v1879_v34  ;;  %v1885_v38 = vld [vmem:[%s2270_s4 + $0x28] ss:$16 sps:$4 sm:$0xff] (!%p938_p13)   ;;  %v1886_v39 = vld [vmem:[%s2272_s6 + $0x40] sm:$0xff] (!%p938_p13)   ;;  %v1894_v48 = vld [vmem:[%s2272_s6 + $0x50] sm:$0xff] (!%p938_p13)   ;;  %v954_v9 = vshrl.u32 (!%p938_p13), %v953_v8, 7 }
 0x21f   : > { %1018 = vmatprep.subr.bf16.mxu0 (!%p938_p13), %v1880_v35  ;;  %1059 = vmatprep.subr.bf16.mxu1 (!%p938_p13), %v1882_v36  ;;  %v1887_v41 = vld [vmem:[%s2272_s6 + $0xc0] sm:$0xff] (!%p938_p13)   ;;  %v1890_v44 = vld [vmem:[%s2272_s6 + $0x48] sm:$0xff] (!%p938_p13)   ;;  %v1895_v49 = vld [vmem:[%s2272_s6 + $0xd0] sm:$0xff] (!%p938_p13)  }
 0x220   : > { %v1888_v42 = vld [vmem:[%s2272_s6] sm:$0xff] (!%p938_p13)   ;;  %v1891_v45 = vld [vmem:[%s2272_s6 + $0xc8] sm:$0xff] (!%p938_p13)   ;;  %v1896_v50 = vld [vmem:[%s2272_s6 + $0x10] sm:$0xff] (!%p938_p13)   ;;  %v955_v10 = vsub.s32 (!%p938_p13), 0, %v954_v9  ;;  %v963_v11 = vsub.s32 (!%p938_p13), 2, %v954_v9  ;;  %v959_v13 = vsub.s32 (!%p938_p13), 1, %v954_v9 }
 0x221   : > { %v1889_v43 = vld [vmem:[%s2272_s6 + $0x80] sm:$0xff] (!%p938_p13)   ;;  %v1892_v46 = vld [vmem:[%s2272_s6 + $0x8] sm:$0xff] (!%p938_p13)   ;;  %v1897_v51 = vld [vmem:[%s2272_s6 + $0x90] sm:$0xff] (!%p938_p13)   ;;  %v967_v14 = vsub.s32 (!%p938_p13), 3, %v954_v9 }
 0x222   : > { %1019 = vmatpush1.bf16.msra.mxu0 (!%p938_p13), %v1884_v37  ;;  %1060 = vmatpush1.bf16.msra.mxu1 (!%p938_p13), %v1885_v38  ;;  %v1893_v47 = vld [vmem:[%s2272_s6 + $0x88] sm:$0xff] (!%p938_p13)   ;;  %v1898_v52 = vld [vmem:[%s2272_s6 + $0x58] sm:$0xff] (!%p938_p13)   ;;  %v1902_v56 = vld [vmem:[%s2272_s6 + $0x60] sm:$0xff] (!%p938_p13)  }
 0x223   : > { %1688 = vmatprep.subr.bf16.mxu0 %v1886_v39  ;;  %1710 = vmatprep.subr.bf16.mxu1 %v1887_v41  ;;  %v1899_v53 = vld [vmem:[%s2272_s6 + $0xd8] sm:$0xff]   ;;  %v1903_v57 = vld [vmem:[%s2272_s6 + $0xe0] sm:$0xff]   ;;  %v1906_v60 = vld [vmem:[%s2272_s6 + $0x68] sm:$0xff]  }
 0x224   : > { %v1900_v54 = vld [vmem:[%s2272_s6 + $0x18] sm:$0xff]   ;;  %v1904_v58 = vld [vmem:[%s2272_s6 + $0x20] sm:$0xff]   ;;  %v1907_v61 = vld [vmem:[%s2272_s6 + $0xe8] sm:$0xff]  }
 0x225   : > { %1624 = vmatmul.mubr.msk.bf16.vlgmr.msra.gmra.mrb[0].mxu0 %vm677_vm5, %v942_v40  ;;  %1625 = vmatmul.mubr.msk.bf16.vlgmr.msra.gmra.mrb[0].mxu1 %vm677_vm5, %v942_v40  ;;  %v1901_v55 = vld [vmem:[%s2272_s6 + $0x98] sm:$0xff]   ;;  %v1905_v59 = vld [vmem:[%s2272_s6 + $0xa0] sm:$0xff]   ;;  %v1908_v62 = vld [vmem:[%s2272_s6 + $0x28] sm:$0xff]  }
 0x226   : > { %1689 = vmatpush3.bf16.msra.mxu0 %v1888_v42  ;;  %1711 = vmatpush3.bf16.msra.mxu1 %v1889_v43  ;;  %v1909_v63 = vld [vmem:[%s2272_s6 + $0xa8] sm:$0xff]   ;;  %v1910_v0 = vld [vmem:[%s2272_s6 + $0x70] sm:$0xff]   ;;  %v1914_v4 = vld [vmem:[%s2272_s6 + $0x78] sm:$0xff]  }
 0x227   : > { %1690 = vmatprep.subr.bf16.mxu0 %v1890_v44  ;;  %1712 = vmatprep.subr.bf16.mxu1 %v1891_v45  ;;  %v1911_v1 = vld [vmem:[%s2272_s6 + $0xf0] sm:$0xff]   ;;  %v1915_v5 = vld [vmem:[%s2272_s6 + $0xf8] sm:$0xff]   ;;  %v951_v12 = vld [vmem:[%s2271_s5] sm:$0xf] }
 0x228   : > { %v1912_v2 = vld [vmem:[%s2272_s6 + $0x30] sm:$0xff]   ;;  %v1916_v6 = vld [vmem:[%s2272_s6 + $0x38] sm:$0xff]   ;;  %v956_v15 = vrot.slane %v951_v12, %v955_v10  ;;  %v964_v16 = vrot.slane %v951_v12, %v963_v11  ;;  %v960_v17 = vrot.slane %v951_v12, %v959_v13  ;;  %v968_v18 = vrot.slane %v951_v12, %v967_v14  ;;  %v1626_v41 = vld [vmem:[%s2273_s7] ss:$0 sm:$0xff] }
 0x229   : > { %v1913_v3 = vld [vmem:[%s2272_s6 + $0xb0] sm:$0xff]   ;;  %v1917_v7 = vld [vmem:[%s2272_s6 + $0xb8] sm:$0xff]  }
 0x22a   : > { %1691 = vmatpush3.bf16.msra.mxu0 %v1892_v46  ;;  %1713 = vmatpush3.bf16.msra.mxu1 %v1893_v47 }
 0x22b   : > { %1692 = vmatprep.subr.bf16.mxu0 %v1894_v48  ;;  %1714 = vmatprep.subr.bf16.mxu1 %v1895_v49 }
 0x22e   : > { %1693 = vmatpush3.bf16.msra.mxu0 %v1896_v50  ;;  %1715 = vmatpush3.bf16.msra.mxu1 %v1897_v51 }
 0x22f   : > { %1694 = vmatprep.subr.bf16.mxu0 %v1898_v52  ;;  %1716 = vmatprep.subr.bf16.mxu1 %v1899_v53 }
 0x232   : > { %1695 = vmatpush3.bf16.msra.mxu0 %v1900_v54  ;;  %1717 = vmatpush3.bf16.msra.mxu1 %v1901_v55 }
 0x233   : > { %1696 = vmatprep.subr.bf16.mxu0 %v1902_v56  ;;  %1718 = vmatprep.subr.bf16.mxu1 %v1903_v57 }
 0x236   : > { %1697 = vmatpush3.bf16.msra.mxu0 %v1904_v58  ;;  %1719 = vmatpush3.bf16.msra.mxu1 %v1905_v59 }
 0x237   : > { %1698 = vmatprep.subr.bf16.mxu0 %v1906_v60  ;;  %1720 = vmatprep.subr.bf16.mxu1 %v1907_v61 }
 0x23a   : > { %1699 = vmatpush3.bf16.msra.mxu0 %v1908_v62  ;;  %1721 = vmatpush3.bf16.msra.mxu1 %v1909_v63 }
 0x23b   : > { %1700 = vmatprep.subr.bf16.mxu0 %v1910_v0  ;;  %1722 = vmatprep.subr.bf16.mxu1 %v1911_v1 }
 0x23e   : > { %1701 = vmatpush3.bf16.msra.mxu0 %v1912_v2  ;;  %1723 = vmatpush3.bf16.msra.mxu1 %v1913_v3 }
 0x23f   : > { %1702 = vmatprep.subr.bf16.mxu0 %v1914_v4  ;;  %1724 = vmatprep.subr.bf16.mxu1 %v1915_v5 }
 0x242   : > { %1703 = vmatpush3.bf16.msra.mxu0 %v1916_v6  ;;  %1725 = vmatpush3.bf16.msra.mxu1 %v1917_v7 }
 0x2f8   : > { %v1050_v19 = vpop.f32.mrb[0].mxu0  ;;  %v1091_v20 = vpop.f32.mrb[0].mxu1 }
 0x2f9   : > { %v1051_v21 = vadd.f32 %v1050_v19, %v956_v15  ;;  %v1092_v22 = vadd.f32 %v1091_v20, %v964_v16  ;;  %v1052_v23 = vpop.f32.mrb[1].mxu0  ;;  %v1093_v24 = vpop.f32.mrb[1].mxu1 }
 0x2fa   : > { %v1053_v25 = vadd.f32 %v1052_v23, %v960_v17  ;;  %v1094_v26 = vadd.f32 %v1093_v24, %v968_v18  ;;  %v1054_v27 = vpop.f32.mrb[2].mxu0  ;;  %v1095_v28 = vpop.f32.mrb[2].mxu1 }
 0x2fb   : > { %v1098_v29 = vmax.f32 %v1051_v21, 0.0  ;;  %v1100_v30 = vmax.f32 %v1092_v22, 0.0  ;;  %v1055_v31 = vpop.f32.mrb[3].mxu0  ;;  %v1096_v32 = vpop.f32.mrb[3].mxu1 }
 0x2fc   : > { %v1099_v33 = vmax.f32 %v1053_v25, 0.0  ;;  %v1101_v34 = vmax.f32 %v1094_v26, 0.0 }
 0x2fd   : > { %v1104_v35 = vpack.c.bf16 %v1100_v30, %v1100_v30  ;;  %v1102_v38 = vpack.c.bf16 %v1098_v29, %v1098_v29 }
 0x2fe   : > { %v1103_v36 = vpack.c.bf16 %v1099_v33, %v1099_v33  ;;  %v1105_v37 = vpack.c.bf16 %v1101_v34, %v1101_v34 }
 0x300   : > { %1401 = vmatprep.mubr.bf16.mxu0 %v1103_v36  ;;  %1441 = vmatprep.mubr.bf16.mxu1 %v1105_v37 }
 0x301   : > { %1402 = vmatmul.mubr.bf16.vlgmr.msra.gmra.mrb[4].mxu0 %v1102_v38  ;;  %1442 = vmatmul.mubr.bf16.vlgmr.msra.gmra.mrb[4].mxu1 %v1104_v35 }
 0x3d4   : > { %v1704_v39 = vpop.f32.mrb[4].mxu0  ;;  %v1726_v40 = vpop.f32.mrb[4].mxu1 }
 0x3d5   : > { %v1705_v42 = vpop.f32.mrb[5].mxu0  ;;  %v1727_v43 = vpop.f32.mrb[5].mxu1 }
 0x3d6   : > { %v1706_v44 = vadd.f32 %v1705_v42, %v1704_v39  ;;  %v1728_v45 = vadd.f32 %v1727_v43, %v1726_v40  ;;  %v1707_v46 = vpop.f32.mrb[6].mxu0  ;;  %v1729_v47 = vpop.f32.mrb[6].mxu1 }
 0x3d7   : > { %v1708_v48 = vpop.f32.mrb[7].mxu0  ;;  %v1730_v49 = vpop.f32.mrb[7].mxu1 }
 0x3d8   : > { %v1404_v50 = vadd.f32 %v1706_v44, %v1626_v41 }
 0x3da   : > { %v1444_v51 = vadd.f32 %v1728_v45, %v1404_v50 }
 0x3dc   : > { %v1450_v52 = vsel %vm1449_vm6, %v1444_v51, -inf }
 0x3dd   : > { %1451 = vmax.xlane.f32.xlu0 %v1450_v52 }
 0x46a   : > { %v1452_v53 = vpop.xlane.xlu0 %1451 }
 0x46b   : > { %v1453_v54 = vsub.f32 %v1444_v51, %v1452_v53 }
 0x46d   : > { %v1454_v55 = vmul.f32 1.442695, %v1453_v54 }
 0x46f   : > { %1918 = vpow2.f32 %v1454_v55 }
 0x479   : > { %v1919_v56 = vpop.eup %1918 }
 0x47a   : > { %v1456_v57 = vsel %vm1449_vm6, %v1919_v56, 0.0 }
 0x47b   : > { %1457 = vadd.xlane.f32.xlu0 %v1456_v57 }
 0x508   : > { %v1458_v58 = vpop.xlane.xlu0 %1457 }
 0x509   : > { %1920 = vrcp.f32 %v1458_v58 }
 0x513   : > { %v1921_v59 = vpop.eup %1920 }
 0x514   : > { %v1460_v60 = vmul.f32 %v1921_v59, %v1919_v56 }
 0x516   : > { %1461 = vst.msk [vmem:[%s2274_s8] sm:$0xff] %vm1449_vm6, %v1460_v60 }
 0x517 PF: > { %s18_s9 = sadd.s32 1, %s1960_s9   ;;  %s2276_s11 = sld [smem:[#allocation6_spill]] }
 0x518   : > { %p15_p0 = scmp.ge.s32.totalorder %s18_s9, 18   ;;  %s2277_s27 = smov %s1952_s29 }
 0x519   : > { %s2278_s28 = smov %s1956_s30  ;;  %s2279_s29 = smov %s2282_s10 }
 0x51a   :  { %17 = sbr.rel (!%p15_p0) target bundleno = 3 (0x3), region = 124 }
 0x51d   : > { %s2280_s30 = smov %s2276_s11 }

</bundles_post_ra>
